<compile_context>
chip_gen: v7x
topology: tpu7x:2x2x1
jax: 0.10.0
libtpu: 0.0.40
codegen_flags: <defaults>
</compile_context>

<pallas_src>
from functools import partial

import jax
import jax.numpy as jnp
from jax.experimental import pallas as pl
from jax.experimental.pallas import tpu as pltpu

# ---------------- small BERT-like config (synthetic, deterministic init) -----
VOCAB = 64
MAX_POS = 16
TYPE_VOCAB = 2
TYPE_PAD = 8                       # type-embedding table zero-padded to 8 rows
HIDDEN = 32
NUM_HEADS = 4
HEAD_DIM = HIDDEN // NUM_HEADS
INTERMEDIATE = 64
NUM_LAYERS = 2
CLASSES = 24
LN_EPS = 1e-12
LANES = 128                        # lane-padded width for packed vectors / logits

# packed small-vector buffer layout: 8 rows per layer + 4 tail rows
_ROWS_PER_LAYER = 8
(_R_QKV_B, _R_AO_B, _R_ALN_G, _R_ALN_B,
 _R_INT_B, _R_OUT_B, _R_OLN_G, _R_OLN_B) = range(8)
_TAIL = NUM_LAYERS * _ROWS_PER_LAYER
_R_EMB_LN_G, _R_EMB_LN_B, _R_POOL_B, _R_FC_B = _TAIL, _TAIL + 1, _TAIL + 2, _TAIL + 3
VEC_ROWS = _TAIL + 4
TAB_ROWS = VOCAB + TYPE_PAD + MAX_POS

_VMEM = pl.BlockSpec(memory_space=pltpu.MemorySpace.VMEM)


# --------------------------- in-kernel helpers --------------------------------
def _layernorm(x, gamma, beta, eps=LN_EPS):
    mu = jnp.mean(x, axis=-1, keepdims=True)
    var = jnp.mean(jnp.square(x - mu), axis=-1, keepdims=True)
    return (x - mu) * jax.lax.rsqrt(var + eps) * gamma + beta


def _gelu(y):
    # TODO(synk): HF BERT uses exact (erf) GELU; tanh approximation is used
    # because erf lowering in Mosaic is not guaranteed.
    c = 0.7978845608028654  # sqrt(2/pi)
    return 0.5 * y * (1.0 + jnp.tanh(c * (y + 0.044715 * y * y * y)))


# ----------------------------- fused BERT kernel ------------------------------
def _bert_fused_kernel(tok_ref, mask_ref, tab_ref, vec_ref,
                       qkv_w_ref, ao_w_ref, inter_w_ref, out_w_ref, head_w_ref,
                       logits_ref, *, batch, seq):
    B, S = batch, seq
    N = B * S
    H, NH, D, I = HIDDEN, NUM_HEADS, HEAD_DIM, INTERMEDIATE
    f32, bf16 = jnp.float32, jnp.bfloat16

    vecs = vec_ref[...]                                    # (VEC_ROWS, 128) f32

    def vrow(r, w):
        return vecs[r:r + 1, :w]                           # (1, w), row-broadcast

    # ---- in-kernel embedding lookup via exact one-hot matmuls (MXU) ---------
    ids = tok_ref[:, 0:1]                                  # (N, 1) int32
    tts = tok_ref[:, 1:2]                                  # (N, 1) int32
    word_oh = (jax.lax.broadcasted_iota(jnp.int32, (N, VOCAB), 1) == ids).astype(f32)
    type_oh = (jax.lax.broadcasted_iota(jnp.int32, (N, TYPE_PAD), 1) == tts).astype(f32)
    word_tab = tab_ref[0:VOCAB, :]                         # (VOCAB, H)
    type_tab = tab_ref[VOCAB:VOCAB + TYPE_PAD, :]          # (TYPE_PAD, H), rows>=2 zero
    pos_rows = tab_ref[VOCAB + TYPE_PAD:VOCAB + TYPE_PAD + S, :]   # (S, H)
    emb = (jnp.dot(word_oh, word_tab, preferred_element_type=f32)
           + jnp.dot(type_oh, type_tab, preferred_element_type=f32)
           + jnp.concatenate([pos_rows] * B, axis=0))      # (N, H)

    x = _layernorm(emb, vrow(_R_EMB_LN_G, H), vrow(_R_EMB_LN_B, H))

    # ---- HF-style additive mask, built once and broadcast to all heads ------
    mask_b = ((1.0 - mask_ref[...]) * -10000.0)[:, None, :]        # (B, 1, S)
    mask3 = jnp.concatenate([mask_b] * NH, axis=0)                  # (NH*B, 1, S)

    # head-major (NH*B, S, D) batching helpers
    def split_heads(t):                                    # (N, NH*D) -> (NH*B, S, D)
        return jnp.concatenate(
            [t[:, h * D:(h + 1) * D].reshape(B, S, D) for h in range(NH)], axis=0)

    def merge_heads(c):                                    # (NH*B, S, D) -> (N, NH*D)
        return jnp.concatenate(
            [c[h * B:(h + 1) * B].reshape(N, D) for h in range(NH)], axis=-1)

    # ---- transformer encoder layers (dropout omitted: eval mode) ------------
    # 2 layers -> static unroll is fine; at real depth stream layer weights
    # with a grid axis / fori_loop instead (see TODO in the wrapper).
    for l in range(NUM_LAYERS):
        r = l * _ROWS_PER_LAYER
        xb = x.astype(bf16)

        # fused QKV projection; 1/sqrt(D) is pre-folded into the Q weight/bias
        qkv = (jnp.dot(xb, qkv_w_ref[l], preferred_element_type=f32)
               + vrow(r + _R_QKV_B, 3 * H))                # (N, 3H) f32
        q3 = split_heads(qkv[:, 0 * H:1 * H])
        k3 = split_heads(qkv[:, 1 * H:2 * H])
        v3 = split_heads(qkv[:, 2 * H:3 * H])

        # batched attention: two batched dot_generals per layer
        s = jnp.einsum('bqd,bkd->bqk', q3.astype(bf16), k3.astype(bf16),
                       preferred_element_type=f32)         # (NH*B, S, S)
        s = s + mask3
        s = s - jnp.max(s, axis=-1, keepdims=True)
        p = jnp.exp(s)
        p = p * pl.reciprocal(jnp.sum(p, axis=-1, keepdims=True), approx=True)
        ctx = merge_heads(
            jnp.einsum('bqk,bkd->bqd', p.astype(bf16), v3.astype(bf16),
                       preferred_element_type=f32))        # (N, H) f32

        # attention output projection + residual + LN
        attn = (jnp.dot(ctx.astype(bf16), ao_w_ref[l], preferred_element_type=f32)
                + vrow(r + _R_AO_B, H))
        x = _layernorm(attn + x, vrow(r + _R_ALN_G, H), vrow(r + _R_ALN_B, H))

        # feed-forward (GELU) + residual + LN
        inter = (jnp.dot(x.astype(bf16), inter_w_ref[l], preferred_element_type=f32)
                 + vrow(r + _R_INT_B, I))
        inter = _gelu(inter)
        out = (jnp.dot(inter.astype(bf16), out_w_ref[l], preferred_element_type=f32)
               + vrow(r + _R_OUT_B, H))
        x = _layernorm(out + x, vrow(r + _R_OLN_G, H), vrow(r + _R_OLN_B, H))

    # ---- pooler (CLS -> dense -> tanh) + classifier, lane-dense output ------
    cls = x.reshape(B, S, H)[:, 0, :]                      # (B, H), no per-batch concat
    fc_w = head_w_ref[:, 0:LANES]                          # (H, 128) bf16, zero-padded
    pool_w = head_w_ref[:, LANES:LANES + H]                # (H, H)  bf16
    pooled = jnp.tanh(
        jnp.dot(cls.astype(bf16), pool_w, preferred_element_type=f32)
        + vrow(_R_POOL_B, H))
    logits_ref[...] = (
        jnp.dot(pooled.astype(bf16), fc_w, preferred_element_type=f32)
        + vecs[_R_FC_B:_R_FC_B + 1, :])                    # (B, 128) padded logits


# ----------------------------- parameter init --------------------------------
def init_params(key):
    def normal(k, shape, scale=0.02):
        return scale * jax.random.normal(k, shape, dtype=jnp.float32)

    keys = iter(jax.random.split(key, 256))
    p = {
        "word_emb": normal(next(keys), (VOCAB, HIDDEN)),
        "pos_emb": normal(next(keys), (MAX_POS, HIDDEN)),
        "type_emb": normal(next(keys), (TYPE_VOCAB, HIDDEN)),
        "emb_ln_g": jnp.ones((HIDDEN,), jnp.float32),
        "emb_ln_b": jnp.zeros((HIDDEN,), jnp.float32),
        "layers": [],
    }
    for _ in range(NUM_LAYERS):
        L = {}
        for name in ("q", "k", "v", "attn_out"):
            L[name + "_w"] = normal(next(keys), (HIDDEN, HIDDEN))
            L[name + "_b"] = jnp.zeros((HIDDEN,), jnp.float32)
        L["attn_ln_g"] = jnp.ones((HIDDEN,), jnp.float32)
        L["attn_ln_b"] = jnp.zeros((HIDDEN,), jnp.float32)
        L["inter_w"] = normal(next(keys), (HIDDEN, INTERMEDIATE))
        L["inter_b"] = jnp.zeros((INTERMEDIATE,), jnp.float32)
        L["out_w"] = normal(next(keys), (INTERMEDIATE, HIDDEN))
        L["out_b"] = jnp.zeros((HIDDEN,), jnp.float32)
        L["out_ln_g"] = jnp.ones((HIDDEN,), jnp.float32)
        L["out_ln_b"] = jnp.zeros((HIDDEN,), jnp.float32)
        p["layers"].append(L)
    p["pool_w"] = normal(next(keys), (HIDDEN, HIDDEN))
    p["pool_b"] = jnp.zeros((HIDDEN,), jnp.float32)
    p["fc_w"] = normal(next(keys), (HIDDEN, CLASSES))
    p["fc_b"] = jnp.zeros((CLASSES,), jnp.float32)
    return p


def pack_params(params):
    """Consolidate parameters for the fused kernel:
       - one (VEC_ROWS, 128) f32 buffer with every LN gamma/beta and bias,
       - one (TAB_ROWS, H) f32 table with word / type(padded) / pos embeddings,
       - bf16 stacked matmul weights with the 1/sqrt(head_dim) score scale
         folded into the Q slice of the fused QKV weight/bias,
       - bf16 (H, 128+H) head weight = [fc (zero-padded to 128 lanes) | pooler]."""
    scale = 1.0 / float(HEAD_DIM) ** 0.5

    def pad_row(v):
        v = v.reshape(-1)
        return jnp.pad(v, (0, LANES - v.shape[0]))

    rows, qkv_w, ao_w, inter_w, out_w = [], [], [], [], []
    for L in params["layers"]:
        qkv_w.append(jnp.concatenate([L["q_w"] * scale, L["k_w"], L["v_w"]], axis=1))
        ao_w.append(L["attn_out_w"])
        inter_w.append(L["inter_w"])
        out_w.append(L["out_w"])
        rows += [
            pad_row(jnp.concatenate([L["q_b"] * scale, L["k_b"], L["v_b"]])),
            pad_row(L["attn_out_b"]),
            pad_row(L["attn_ln_g"]), pad_row(L["attn_ln_b"]),
            pad_row(L["inter_b"]),
            pad_row(L["out_b"]),
            pad_row(L["out_ln_g"]), pad_row(L["out_ln_b"]),
        ]
    rows += [pad_row(params["emb_ln_g"]), pad_row(params["emb_ln_b"]),
             pad_row(params["pool_b"]), pad_row(params["fc_b"])]
    vecs = jnp.stack(rows).astype(jnp.float32)                        # (VEC_ROWS, 128)

    tables = jnp.concatenate([
        params["word_emb"],
        jnp.pad(params["type_emb"], ((0, TYPE_PAD - TYPE_VOCAB), (0, 0))),
        params["pos_emb"],
    ], axis=0).astype(jnp.float32)                                     # (TAB_ROWS, H)

    fc_w_pad = jnp.pad(params["fc_w"], ((0, 0), (0, LANES - CLASSES)))  # (H, 128)
    head_w = jnp.concatenate([fc_w_pad, params["pool_w"]], axis=1)      # (H, 128+H)

    return {
        "tables": tables, "vecs": vecs,
        "qkv_w": jnp.stack(qkv_w).astype(jnp.bfloat16),                # (L, H, 3H)
        "ao_w": jnp.stack(ao_w).astype(jnp.bfloat16),                  # (L, H, H)
        "inter_w": jnp.stack(inter_w).astype(jnp.bfloat16),            # (L, H, I)
        "out_w": jnp.stack(out_w).astype(jnp.bfloat16),                # (L, I, H)
        "head_w": head_w.astype(jnp.bfloat16),                         # (H, 128+H)
    }


# ------------------------------- forward pass --------------------------------
def bert_model_forward(params, input_ids, attention_mask=None, token_type_ids=None):
    B, S = input_ids.shape
    if attention_mask is None:
        attention_mask = jnp.ones((B, S), jnp.int32)
    if token_type_ids is None:
        token_type_ids = jnp.zeros((B, S), jnp.int32)

    tok = jnp.stack([input_ids.reshape(-1).astype(jnp.int32),
                     token_type_ids.reshape(-1).astype(jnp.int32)], axis=1)  # (B*S, 2)
    mask_f32 = attention_mask.astype(jnp.float32)                            # (B, S)
    pk = pack_params(params)

    # Single fused pallas_call: embeddings + encoder + pooler + classifier.
    # TODO(synk): at real BERT sizes (H=768, 12+ layers, S>=128) stream the
    # layer weights with an "arbitrary" grid axis instead of keeping them
    # resident, tile B*S rows with a "parallel" grid axis (v7x dual TC), and
    # raise pltpu.CompilerParams(vmem_limit_bytes=...) (scoped defaults:
    # 16 MiB v5e / 32 MiB v6e / 32 MiB v7x). Unnecessary at this toy size.
    logits_pad = pl.pallas_call(
        partial(_bert_fused_kernel, batch=B, seq=S),
        out_shape=jax.ShapeDtypeStruct((B, LANES), jnp.float32),
        in_specs=[_VMEM] * 9,
        out_specs=_VMEM,
    )(tok, mask_f32, pk["tables"], pk["vecs"],
      pk["qkv_w"], pk["ao_w"], pk["inter_w"], pk["out_w"], pk["head_w"])
    return logits_pad[:, :CLASSES]


# ----------------------------------- main -------------------------------------
if __name__ == "__main__":
    key = jax.random.PRNGKey(0)
    k_param, k_ids = jax.random.split(key)

    B, S = 2, 8
    params = init_params(k_param)
    input_ids = jax.random.randint(k_ids, (B, S), 0, VOCAB, dtype=jnp.int32)
    attention_mask = jnp.ones((B, S), jnp.int32)
    token_type_ids = jnp.zeros((B, S), jnp.int32)

    fwd = jax.jit(bert_model_forward)
    logits = fwd(params, input_ids, attention_mask, token_type_ids)
    logits = jax.block_until_ready(logits)
    assert logits.shape == (B, CLASSES) and logits.dtype == jnp.float32
    print("KERNEL_OK")
</pallas_src>

<mosaic_0001>
module attributes {stable_mosaic.version = 11 : i64} {
  func.func @_bert_fused_kernel(%arg0: memref<16x2xi32, #tpu.memory_space<vmem>>, %arg1: memref<2x8xf32, #tpu.memory_space<vmem>>, %arg2: memref<88x32xf32, #tpu.memory_space<vmem>>, %arg3: memref<20x128xf32, #tpu.memory_space<vmem>>, %arg4: memref<2x32x96xbf16, #tpu.memory_space<vmem>>, %arg5: memref<2x32x32xbf16, #tpu.memory_space<vmem>>, %arg6: memref<2x32x64xbf16, #tpu.memory_space<vmem>>, %arg7: memref<2x64x32xbf16, #tpu.memory_space<vmem>>, %arg8: memref<32x160xbf16, #tpu.memory_space<vmem>>, %arg9: memref<2x128xf32, #tpu.memory_space<vmem>>) attributes {dimension_semantics = [], scalar_prefetch = 0 : i64, scratch_operands = 0 : i64, tpu.core_type = #tpu.core_type<tc>} {
    %c0 = arith.constant 0 : index
    %c0_0 = arith.constant 0 : index
    %0 = vector.load %arg3[%c0, %c0_0] : memref<20x128xf32, #tpu.memory_space<vmem>>, vector<20x128xf32>
    %c0_1 = arith.constant 0 : index
    %c0_2 = arith.constant 0 : index
    %1 = vector.load %arg0[%c0_1, %c0_2] : memref<16x2xi32, #tpu.memory_space<vmem>>, vector<16x1xi32>
    %c0_3 = arith.constant 0 : index
    %c1 = arith.constant 1 : index
    %2 = vector.load %arg0[%c0_3, %c1] : memref<16x2xi32, #tpu.memory_space<vmem>>, vector<16x1xi32>
    %3 = tpu.iota {dimensions = array<i32: 1>} : vector<16x64xi32>
    %4 = vector.broadcast %1 : vector<16x1xi32> to vector<16x64xi32>
    %5 = arith.cmpi eq, %3, %4 : vector<16x64xi32>
    %6 = arith.extui %5 : vector<16x64xi1> to vector<16x64xi32>
    %7 = arith.sitofp %6 : vector<16x64xi32> to vector<16x64xf32>
    %8 = tpu.iota {dimensions = array<i32: 1>} : vector<16x8xi32>
    %9 = vector.broadcast %2 : vector<16x1xi32> to vector<16x8xi32>
    %10 = arith.cmpi eq, %8, %9 : vector<16x8xi32>
    %11 = arith.extui %10 : vector<16x8xi1> to vector<16x8xi32>
    %12 = arith.sitofp %11 : vector<16x8xi32> to vector<16x8xf32>
    %c0_4 = arith.constant 0 : index
    %c0_5 = arith.constant 0 : index
    %13 = vector.load %arg2[%c0_4, %c0_5] : memref<88x32xf32, #tpu.memory_space<vmem>>, vector<64x32xf32>
    %c64 = arith.constant 64 : index
    %c0_6 = arith.constant 0 : index
    %14 = vector.load %arg2[%c64, %c0_6] : memref<88x32xf32, #tpu.memory_space<vmem>>, vector<8x32xf32>
    %c72 = arith.constant 72 : index
    %c0_7 = arith.constant 0 : index
    %15 = vector.load %arg2[%c72, %c0_7] : memref<88x32xf32, #tpu.memory_space<vmem>>, vector<8x32xf32>
    %cst = arith.constant dense<0.000000e+00> : vector<16x32xf32>
    %16 = tpu.matmul %7, %13, %cst {dimension_numbers = #tpu.dot_dimension_numbers<[1], [0], [0], [1], [0, 0, 1, 1], [], []>} : vector<16x64xf32>, vector<64x32xf32>, vector<16x32xf32> -> vector<16x32xf32>
    %cst_8 = arith.constant dense<0.000000e+00> : vector<16x32xf32>
    %17 = tpu.matmul %12, %14, %cst_8 {dimension_numbers = #tpu.dot_dimension_numbers<[1], [0], [0], [1], [0, 0, 1, 1], [], []>} : vector<16x8xf32>, vector<8x32xf32>, vector<16x32xf32> -> vector<16x32xf32>
    %18 = arith.addf %16, %17 : vector<16x32xf32>
    %19 = tpu.concatenate %15, %15 in 0 : vector<8x32xf32>, vector<8x32xf32> -> vector<16x32xf32>
    %20 = arith.addf %18, %19 : vector<16x32xf32>
    %21 = vector.extract_strided_slice %0 {offsets = [16, 0], sizes = [1, 32], strides = [1, 1]} : vector<20x128xf32> to vector<1x32xf32>
    %22 = vector.extract_strided_slice %0 {offsets = [17, 0], sizes = [1, 32], strides = [1, 1]} : vector<20x128xf32> to vector<1x32xf32>
    %cst_9 = arith.constant dense<0.000000e+00> : vector<16xf32>
    %23 = vector.multi_reduction <add>, %20, %cst_9 [1] : vector<16x32xf32> to vector<16xf32>
    %24 = vector.shape_cast %23 : vector<16xf32> to vector<16x1xf32>
    %cst_10 = arith.constant 3.200000e+01 : f32
    %25 = vector.broadcast %cst_10 : f32 to vector<16x1xf32>
    %26 = arith.divf %24, %25 : vector<16x1xf32>
    %27 = vector.broadcast %26 : vector<16x1xf32> to vector<16x32xf32>
    %28 = arith.subf %20, %27 : vector<16x32xf32>
    %29 = arith.mulf %28, %28 : vector<16x32xf32>
    %cst_11 = arith.constant dense<0.000000e+00> : vector<16xf32>
    %30 = vector.multi_reduction <add>, %29, %cst_11 [1] : vector<16x32xf32> to vector<16xf32>
    %31 = vector.shape_cast %30 : vector<16xf32> to vector<16x1xf32>
    %cst_12 = arith.constant 3.200000e+01 : f32
    %32 = vector.broadcast %cst_12 : f32 to vector<16x1xf32>
    %33 = arith.divf %31, %32 : vector<16x1xf32>
    %34 = vector.broadcast %26 : vector<16x1xf32> to vector<16x32xf32>
    %35 = arith.subf %20, %34 : vector<16x32xf32>
    %cst_13 = arith.constant 9.99999996E-13 : f32
    %36 = vector.broadcast %cst_13 : f32 to vector<16x1xf32>
    %37 = arith.addf %33, %36 : vector<16x1xf32>
    %38 = math.rsqrt %37 : vector<16x1xf32>
    %39 = vector.broadcast %38 : vector<16x1xf32> to vector<16x32xf32>
    %40 = arith.mulf %35, %39 : vector<16x32xf32>
    %41 = vector.broadcast %21 : vector<1x32xf32> to vector<16x32xf32>
    %42 = arith.mulf %40, %41 : vector<16x32xf32>
    %43 = vector.broadcast %22 : vector<1x32xf32> to vector<16x32xf32>
    %44 = arith.addf %42, %43 : vector<16x32xf32>
    %c0_14 = arith.constant 0 : index
    %c0_15 = arith.constant 0 : index
    %45 = vector.load %arg1[%c0_14, %c0_15] : memref<2x8xf32, #tpu.memory_space<vmem>>, vector<2x8xf32>
    %cst_16 = arith.constant 1.000000e+00 : f32
    %46 = vector.broadcast %cst_16 : f32 to vector<2x8xf32>
    %47 = arith.subf %46, %45 : vector<2x8xf32>
    %cst_17 = arith.constant -1.000000e+04 : f32
    %48 = vector.broadcast %cst_17 : f32 to vector<2x8xf32>
    %49 = arith.mulf %47, %48 : vector<2x8xf32>
    %50 = vector.shape_cast %49 : vector<2x8xf32> to vector<2x1x8xf32>
    %51 = tpu.concatenate %50, %50, %50, %50 in 0 : vector<2x1x8xf32>, vector<2x1x8xf32>, vector<2x1x8xf32>, vector<2x1x8xf32> -> vector<8x1x8xf32>
    %52 = arith.truncf %44 : vector<16x32xf32> to vector<16x32xbf16>
    %c0_18 = arith.constant 0 : index
    %c0_19 = arith.constant 0 : index
    %c0_20 = arith.constant 0 : index
    %53 = vector.load %arg4[%c0_18, %c0_19, %c0_20] : memref<2x32x96xbf16, #tpu.memory_space<vmem>>, vector<1x32x96xbf16>
    %54 = vector.shape_cast %53 : vector<1x32x96xbf16> to vector<32x96xbf16>
    %cst_21 = arith.constant dense<0.000000e+00> : vector<16x96xf32>
    %55 = tpu.matmul %52, %54, %cst_21 {dimension_numbers = #tpu.dot_dimension_numbers<[1], [0], [0], [1], [0, 0, 1, 1], [], []>} : vector<16x32xbf16>, vector<32x96xbf16>, vector<16x96xf32> -> vector<16x96xf32>
    %56 = vector.extract_strided_slice %0 {offsets = [0, 0], sizes = [1, 96], strides = [1, 1]} : vector<20x128xf32> to vector<1x96xf32>
    %57 = vector.broadcast %56 : vector<1x96xf32> to vector<16x96xf32>
    %58 = arith.addf %55, %57 : vector<16x96xf32>
    %59 = vector.extract_strided_slice %58 {offsets = [0, 0], sizes = [16, 32], strides = [1, 1]} : vector<16x96xf32> to vector<16x32xf32>
    %60 = vector.extract_strided_slice %59 {offsets = [0, 0], sizes = [16, 8], strides = [1, 1]} : vector<16x32xf32> to vector<16x8xf32>
    %61 = vector.shape_cast %60 : vector<16x8xf32> to vector<2x8x8xf32>
    %62 = vector.extract_strided_slice %59 {offsets = [0, 8], sizes = [16, 8], strides = [1, 1]} : vector<16x32xf32> to vector<16x8xf32>
    %63 = vector.shape_cast %62 : vector<16x8xf32> to vector<2x8x8xf32>
    %64 = vector.extract_strided_slice %59 {offsets = [0, 16], sizes = [16, 8], strides = [1, 1]} : vector<16x32xf32> to vector<16x8xf32>
    %65 = vector.shape_cast %64 : vector<16x8xf32> to vector<2x8x8xf32>
    %66 = vector.extract_strided_slice %59 {offsets = [0, 24], sizes = [16, 8], strides = [1, 1]} : vector<16x32xf32> to vector<16x8xf32>
    %67 = vector.shape_cast %66 : vector<16x8xf32> to vector<2x8x8xf32>
    %68 = tpu.concatenate %61, %63, %65, %67 in 0 : vector<2x8x8xf32>, vector<2x8x8xf32>, vector<2x8x8xf32>, vector<2x8x8xf32> -> vector<8x8x8xf32>
    %69 = vector.extract_strided_slice %58 {offsets = [0, 32], sizes = [16, 32], strides = [1, 1]} : vector<16x96xf32> to vector<16x32xf32>
    %70 = vector.extract_strided_slice %69 {offsets = [0, 0], sizes = [16, 8], strides = [1, 1]} : vector<16x32xf32> to vector<16x8xf32>
    %71 = vector.shape_cast %70 : vector<16x8xf32> to vector<2x8x8xf32>
    %72 = vector.extract_strided_slice %69 {offsets = [0, 8], sizes = [16, 8], strides = [1, 1]} : vector<16x32xf32> to vector<16x8xf32>
    %73 = vector.shape_cast %72 : vector<16x8xf32> to vector<2x8x8xf32>
    %74 = vector.extract_strided_slice %69 {offsets = [0, 16], sizes = [16, 8], strides = [1, 1]} : vector<16x32xf32> to vector<16x8xf32>
    %75 = vector.shape_cast %74 : vector<16x8xf32> to vector<2x8x8xf32>
    %76 = vector.extract_strided_slice %69 {offsets = [0, 24], sizes = [16, 8], strides = [1, 1]} : vector<16x32xf32> to vector<16x8xf32>
    %77 = vector.shape_cast %76 : vector<16x8xf32> to vector<2x8x8xf32>
    %78 = tpu.concatenate %71, %73, %75, %77 in 0 : vector<2x8x8xf32>, vector<2x8x8xf32>, vector<2x8x8xf32>, vector<2x8x8xf32> -> vector<8x8x8xf32>
    %79 = vector.extract_strided_slice %58 {offsets = [0, 64], sizes = [16, 32], strides = [1, 1]} : vector<16x96xf32> to vector<16x32xf32>
    %80 = vector.extract_strided_slice %79 {offsets = [0, 0], sizes = [16, 8], strides = [1, 1]} : vector<16x32xf32> to vector<16x8xf32>
    %81 = vector.shape_cast %80 : vector<16x8xf32> to vector<2x8x8xf32>
    %82 = vector.extract_strided_slice %79 {offsets = [0, 8], sizes = [16, 8], strides = [1, 1]} : vector<16x32xf32> to vector<16x8xf32>
    %83 = vector.shape_cast %82 : vector<16x8xf32> to vector<2x8x8xf32>
    %84 = vector.extract_strided_slice %79 {offsets = [0, 16], sizes = [16, 8], strides = [1, 1]} : vector<16x32xf32> to vector<16x8xf32>
    %85 = vector.shape_cast %84 : vector<16x8xf32> to vector<2x8x8xf32>
    %86 = vector.extract_strided_slice %79 {offsets = [0, 24], sizes = [16, 8], strides = [1, 1]} : vector<16x32xf32> to vector<16x8xf32>
    %87 = vector.shape_cast %86 : vector<16x8xf32> to vector<2x8x8xf32>
    %88 = tpu.concatenate %81, %83, %85, %87 in 0 : vector<2x8x8xf32>, vector<2x8x8xf32>, vector<2x8x8xf32>, vector<2x8x8xf32> -> vector<8x8x8xf32>
    %89 = arith.truncf %68 : vector<8x8x8xf32> to vector<8x8x8xbf16>
    %90 = arith.truncf %78 : vector<8x8x8xf32> to vector<8x8x8xbf16>
    "tpu.trace_start"() <{level = 10 : i32, message = "bqd,bkd->bqk"}> : () -> ()
    %cst_22 = arith.constant dense<0.000000e+00> : vector<8x8x8xf32>
    %91 = tpu.matmul %89, %90, %cst_22 {dimension_numbers = #tpu.dot_dimension_numbers<[2], [2], [1], [1], [0, 0, 0, 1, 1, 1], [0], [0]>} : vector<8x8x8xbf16>, vector<8x8x8xbf16>, vector<8x8x8xf32> -> vector<8x8x8xf32>
    "tpu.trace_stop"() : () -> ()
    %92 = vector.broadcast %51 : vector<8x1x8xf32> to vector<8x8x8xf32>
    %93 = arith.addf %91, %92 : vector<8x8x8xf32>
    %cst_23 = arith.constant dense<0xFF800000> : vector<8x8xf32>
    %94 = vector.multi_reduction <maximumf>, %93, %cst_23 [2] : vector<8x8x8xf32> to vector<8x8xf32>
    %95 = vector.shape_cast %94 : vector<8x8xf32> to vector<8x8x1xf32>
    %96 = vector.broadcast %95 : vector<8x8x1xf32> to vector<8x8x8xf32>
    %97 = arith.subf %93, %96 : vector<8x8x8xf32>
    %98 = math.exp %97 : vector<8x8x8xf32>
    %cst_24 = arith.constant dense<0.000000e+00> : vector<8x8xf32>
    %99 = vector.multi_reduction <add>, %98, %cst_24 [2] : vector<8x8x8xf32> to vector<8x8xf32>
    %100 = vector.shape_cast %99 : vector<8x8xf32> to vector<8x8x1xf32>
    %101 = tpu.reciprocal %100 {approx = true} : vector<8x8x1xf32> -> vector<8x8x1xf32>
    %102 = vector.broadcast %101 : vector<8x8x1xf32> to vector<8x8x8xf32>
    %103 = arith.mulf %98, %102 : vector<8x8x8xf32>
    %104 = arith.truncf %103 : vector<8x8x8xf32> to vector<8x8x8xbf16>
    %105 = arith.truncf %88 : vector<8x8x8xf32> to vector<8x8x8xbf16>
    "tpu.trace_start"() <{level = 10 : i32, message = "bqk,bkd->bqd"}> : () -> ()
    %cst_25 = arith.constant dense<0.000000e+00> : vector<8x8x8xf32>
    %106 = tpu.matmul %104, %105, %cst_25 {dimension_numbers = #tpu.dot_dimension_numbers<[2], [1], [1], [2], [0, 0, 0, 1, 1, 2], [0], [0]>} : vector<8x8x8xbf16>, vector<8x8x8xbf16>, vector<8x8x8xf32> -> vector<8x8x8xf32>
    "tpu.trace_stop"() : () -> ()
    %107 = vector.extract_strided_slice %106 {offsets = [0, 0, 0], sizes = [2, 8, 8], strides = [1, 1, 1]} : vector<8x8x8xf32> to vector<2x8x8xf32>
    %108 = vector.shape_cast %107 : vector<2x8x8xf32> to vector<16x8xf32>
    %109 = vector.extract_strided_slice %106 {offsets = [2, 0, 0], sizes = [2, 8, 8], strides = [1, 1, 1]} : vector<8x8x8xf32> to vector<2x8x8xf32>
    %110 = vector.shape_cast %109 : vector<2x8x8xf32> to vector<16x8xf32>
    %111 = vector.extract_strided_slice %106 {offsets = [4, 0, 0], sizes = [2, 8, 8], strides = [1, 1, 1]} : vector<8x8x8xf32> to vector<2x8x8xf32>
    %112 = vector.shape_cast %111 : vector<2x8x8xf32> to vector<16x8xf32>
    %113 = vector.extract_strided_slice %106 {offsets = [6, 0, 0], sizes = [2, 8, 8], strides = [1, 1, 1]} : vector<8x8x8xf32> to vector<2x8x8xf32>
    %114 = vector.shape_cast %113 : vector<2x8x8xf32> to vector<16x8xf32>
    %115 = tpu.concatenate %108, %110, %112, %114 in 1 : vector<16x8xf32>, vector<16x8xf32>, vector<16x8xf32>, vector<16x8xf32> -> vector<16x32xf32>
    %116 = arith.truncf %115 : vector<16x32xf32> to vector<16x32xbf16>
    %c0_26 = arith.constant 0 : index
    %c0_27 = arith.constant 0 : index
    %c0_28 = arith.constant 0 : index
    %117 = vector.load %arg5[%c0_26, %c0_27, %c0_28] : memref<2x32x32xbf16, #tpu.memory_space<vmem>>, vector<1x32x32xbf16>
    %118 = vector.shape_cast %117 : vector<1x32x32xbf16> to vector<32x32xbf16>
    %cst_29 = arith.constant dense<0.000000e+00> : vector<16x32xf32>
    %119 = tpu.matmul %116, %118, %cst_29 {dimension_numbers = #tpu.dot_dimension_numbers<[1], [0], [0], [1], [0, 0, 1, 1], [], []>} : vector<16x32xbf16>, vector<32x32xbf16>, vector<16x32xf32> -> vector<16x32xf32>
    %120 = vector.extract_strided_slice %0 {offsets = [1, 0], sizes = [1, 32], strides = [1, 1]} : vector<20x128xf32> to vector<1x32xf32>
    %121 = vector.broadcast %120 : vector<1x32xf32> to vector<16x32xf32>
    %122 = arith.addf %119, %121 : vector<16x32xf32>
    %123 = arith.addf %122, %44 : vector<16x32xf32>
    %124 = vector.extract_strided_slice %0 {offsets = [2, 0], sizes = [1, 32], strides = [1, 1]} : vector<20x128xf32> to vector<1x32xf32>
    %125 = vector.extract_strided_slice %0 {offsets = [3, 0], sizes = [1, 32], strides = [1, 1]} : vector<20x128xf32> to vector<1x32xf32>
    %cst_30 = arith.constant dense<0.000000e+00> : vector<16xf32>
    %126 = vector.multi_reduction <add>, %123, %cst_30 [1] : vector<16x32xf32> to vector<16xf32>
    %127 = vector.shape_cast %126 : vector<16xf32> to vector<16x1xf32>
    %cst_31 = arith.constant 3.200000e+01 : f32
    %128 = vector.broadcast %cst_31 : f32 to vector<16x1xf32>
    %129 = arith.divf %127, %128 : vector<16x1xf32>
    %130 = vector.broadcast %129 : vector<16x1xf32> to vector<16x32xf32>
    %131 = arith.subf %123, %130 : vector<16x32xf32>
    %132 = arith.mulf %131, %131 : vector<16x32xf32>
    %cst_32 = arith.constant dense<0.000000e+00> : vector<16xf32>
    %133 = vector.multi_reduction <add>, %132, %cst_32 [1] : vector<16x32xf32> to vector<16xf32>
    %134 = vector.shape_cast %133 : vector<16xf32> to vector<16x1xf32>
    %cst_33 = arith.constant 3.200000e+01 : f32
    %135 = vector.broadcast %cst_33 : f32 to vector<16x1xf32>
    %136 = arith.divf %134, %135 : vector<16x1xf32>
    %137 = vector.broadcast %129 : vector<16x1xf32> to vector<16x32xf32>
    %138 = arith.subf %123, %137 : vector<16x32xf32>
    %cst_34 = arith.constant 9.99999996E-13 : f32
    %139 = vector.broadcast %cst_34 : f32 to vector<16x1xf32>
    %140 = arith.addf %136, %139 : vector<16x1xf32>
    %141 = math.rsqrt %140 : vector<16x1xf32>
    %142 = vector.broadcast %141 : vector<16x1xf32> to vector<16x32xf32>
    %143 = arith.mulf %138, %142 : vector<16x32xf32>
    %144 = vector.broadcast %124 : vector<1x32xf32> to vector<16x32xf32>
    %145 = arith.mulf %143, %144 : vector<16x32xf32>
    %146 = vector.broadcast %125 : vector<1x32xf32> to vector<16x32xf32>
    %147 = arith.addf %145, %146 : vector<16x32xf32>
    %148 = arith.truncf %147 : vector<16x32xf32> to vector<16x32xbf16>
    %c0_35 = arith.constant 0 : index
    %c0_36 = arith.constant 0 : index
    %c0_37 = arith.constant 0 : index
    %149 = vector.load %arg6[%c0_35, %c0_36, %c0_37] : memref<2x32x64xbf16, #tpu.memory_space<vmem>>, vector<1x32x64xbf16>
    %150 = vector.shape_cast %149 : vector<1x32x64xbf16> to vector<32x64xbf16>
    %cst_38 = arith.constant dense<0.000000e+00> : vector<16x64xf32>
    %151 = tpu.matmul %148, %150, %cst_38 {dimension_numbers = #tpu.dot_dimension_numbers<[1], [0], [0], [1], [0, 0, 1, 1], [], []>} : vector<16x32xbf16>, vector<32x64xbf16>, vector<16x64xf32> -> vector<16x64xf32>
    %152 = vector.extract_strided_slice %0 {offsets = [4, 0], sizes = [1, 64], strides = [1, 1]} : vector<20x128xf32> to vector<1x64xf32>
    %153 = vector.broadcast %152 : vector<1x64xf32> to vector<16x64xf32>
    %154 = arith.addf %151, %153 : vector<16x64xf32>
    %cst_39 = arith.constant 5.000000e-01 : f32
    %155 = vector.broadcast %cst_39 : f32 to vector<16x64xf32>
    %156 = arith.mulf %155, %154 : vector<16x64xf32>
    %cst_40 = arith.constant 4.471500e-02 : f32
    %157 = vector.broadcast %cst_40 : f32 to vector<16x64xf32>
    %158 = arith.mulf %157, %154 : vector<16x64xf32>
    %159 = arith.mulf %158, %154 : vector<16x64xf32>
    %160 = arith.mulf %159, %154 : vector<16x64xf32>
    %161 = arith.addf %154, %160 : vector<16x64xf32>
    %cst_41 = arith.constant 0.797884583 : f32
    %162 = vector.broadcast %cst_41 : f32 to vector<16x64xf32>
    %163 = arith.mulf %162, %161 : vector<16x64xf32>
    %164 = math.tanh %163 : vector<16x64xf32>
    %cst_42 = arith.constant 1.000000e+00 : f32
    %165 = vector.broadcast %cst_42 : f32 to vector<16x64xf32>
    %166 = arith.addf %165, %164 : vector<16x64xf32>
    %167 = arith.mulf %156, %166 : vector<16x64xf32>
    %168 = arith.truncf %167 : vector<16x64xf32> to vector<16x64xbf16>
    %c0_43 = arith.constant 0 : index
    %c0_44 = arith.constant 0 : index
    %c0_45 = arith.constant 0 : index
    %169 = vector.load %arg7[%c0_43, %c0_44, %c0_45] : memref<2x64x32xbf16, #tpu.memory_space<vmem>>, vector<1x64x32xbf16>
    %170 = vector.shape_cast %169 : vector<1x64x32xbf16> to vector<64x32xbf16>
    %cst_46 = arith.constant dense<0.000000e+00> : vector<16x32xf32>
    %171 = tpu.matmul %168, %170, %cst_46 {dimension_numbers = #tpu.dot_dimension_numbers<[1], [0], [0], [1], [0, 0, 1, 1], [], []>} : vector<16x64xbf16>, vector<64x32xbf16>, vector<16x32xf32> -> vector<16x32xf32>
    %172 = vector.extract_strided_slice %0 {offsets = [5, 0], sizes = [1, 32], strides = [1, 1]} : vector<20x128xf32> to vector<1x32xf32>
    %173 = vector.broadcast %172 : vector<1x32xf32> to vector<16x32xf32>
    %174 = arith.addf %171, %173 : vector<16x32xf32>
    %175 = arith.addf %174, %147 : vector<16x32xf32>
    %176 = vector.extract_strided_slice %0 {offsets = [6, 0], sizes = [1, 32], strides = [1, 1]} : vector<20x128xf32> to vector<1x32xf32>
    %177 = vector.extract_strided_slice %0 {offsets = [7, 0], sizes = [1, 32], strides = [1, 1]} : vector<20x128xf32> to vector<1x32xf32>
    %cst_47 = arith.constant dense<0.000000e+00> : vector<16xf32>
    %178 = vector.multi_reduction <add>, %175, %cst_47 [1] : vector<16x32xf32> to vector<16xf32>
    %179 = vector.shape_cast %178 : vector<16xf32> to vector<16x1xf32>
    %cst_48 = arith.constant 3.200000e+01 : f32
    %180 = vector.broadcast %cst_48 : f32 to vector<16x1xf32>
    %181 = arith.divf %179, %180 : vector<16x1xf32>
    %182 = vector.broadcast %181 : vector<16x1xf32> to vector<16x32xf32>
    %183 = arith.subf %175, %182 : vector<16x32xf32>
    %184 = arith.mulf %183, %183 : vector<16x32xf32>
    %cst_49 = arith.constant dense<0.000000e+00> : vector<16xf32>
    %185 = vector.multi_reduction <add>, %184, %cst_49 [1] : vector<16x32xf32> to vector<16xf32>
    %186 = vector.shape_cast %185 : vector<16xf32> to vector<16x1xf32>
    %cst_50 = arith.constant 3.200000e+01 : f32
    %187 = vector.broadcast %cst_50 : f32 to vector<16x1xf32>
    %188 = arith.divf %186, %187 : vector<16x1xf32>
    %189 = vector.broadcast %181 : vector<16x1xf32> to vector<16x32xf32>
    %190 = arith.subf %175, %189 : vector<16x32xf32>
    %cst_51 = arith.constant 9.99999996E-13 : f32
    %191 = vector.broadcast %cst_51 : f32 to vector<16x1xf32>
    %192 = arith.addf %188, %191 : vector<16x1xf32>
    %193 = math.rsqrt %192 : vector<16x1xf32>
    %194 = vector.broadcast %193 : vector<16x1xf32> to vector<16x32xf32>
    %195 = arith.mulf %190, %194 : vector<16x32xf32>
    %196 = vector.broadcast %176 : vector<1x32xf32> to vector<16x32xf32>
    %197 = arith.mulf %195, %196 : vector<16x32xf32>
    %198 = vector.broadcast %177 : vector<1x32xf32> to vector<16x32xf32>
    %199 = arith.addf %197, %198 : vector<16x32xf32>
    %200 = arith.truncf %199 : vector<16x32xf32> to vector<16x32xbf16>
    %c1_52 = arith.constant 1 : index
    %c0_53 = arith.constant 0 : index
    %c0_54 = arith.constant 0 : index
    %201 = vector.load %arg4[%c1_52, %c0_53, %c0_54] : memref<2x32x96xbf16, #tpu.memory_space<vmem>>, vector<1x32x96xbf16>
    %202 = vector.shape_cast %201 : vector<1x32x96xbf16> to vector<32x96xbf16>
    %cst_55 = arith.constant dense<0.000000e+00> : vector<16x96xf32>
    %203 = tpu.matmul %200, %202, %cst_55 {dimension_numbers = #tpu.dot_dimension_numbers<[1], [0], [0], [1], [0, 0, 1, 1], [], []>} : vector<16x32xbf16>, vector<32x96xbf16>, vector<16x96xf32> -> vector<16x96xf32>
    %204 = vector.extract_strided_slice %0 {offsets = [8, 0], sizes = [1, 96], strides = [1, 1]} : vector<20x128xf32> to vector<1x96xf32>
    %205 = vector.broadcast %204 : vector<1x96xf32> to vector<16x96xf32>
    %206 = arith.addf %203, %205 : vector<16x96xf32>
    %207 = vector.extract_strided_slice %206 {offsets = [0, 0], sizes = [16, 32], strides = [1, 1]} : vector<16x96xf32> to vector<16x32xf32>
    %208 = vector.extract_strided_slice %207 {offsets = [0, 0], sizes = [16, 8], strides = [1, 1]} : vector<16x32xf32> to vector<16x8xf32>
    %209 = vector.shape_cast %208 : vector<16x8xf32> to vector<2x8x8xf32>
    %210 = vector.extract_strided_slice %207 {offsets = [0, 8], sizes = [16, 8], strides = [1, 1]} : vector<16x32xf32> to vector<16x8xf32>
    %211 = vector.shape_cast %210 : vector<16x8xf32> to vector<2x8x8xf32>
    %212 = vector.extract_strided_slice %207 {offsets = [0, 16], sizes = [16, 8], strides = [1, 1]} : vector<16x32xf32> to vector<16x8xf32>
    %213 = vector.shape_cast %212 : vector<16x8xf32> to vector<2x8x8xf32>
    %214 = vector.extract_strided_slice %207 {offsets = [0, 24], sizes = [16, 8], strides = [1, 1]} : vector<16x32xf32> to vector<16x8xf32>
    %215 = vector.shape_cast %214 : vector<16x8xf32> to vector<2x8x8xf32>
    %216 = tpu.concatenate %209, %211, %213, %215 in 0 : vector<2x8x8xf32>, vector<2x8x8xf32>, vector<2x8x8xf32>, vector<2x8x8xf32> -> vector<8x8x8xf32>
    %217 = vector.extract_strided_slice %206 {offsets = [0, 32], sizes = [16, 32], strides = [1, 1]} : vector<16x96xf32> to vector<16x32xf32>
    %218 = vector.extract_strided_slice %217 {offsets = [0, 0], sizes = [16, 8], strides = [1, 1]} : vector<16x32xf32> to vector<16x8xf32>
    %219 = vector.shape_cast %218 : vector<16x8xf32> to vector<2x8x8xf32>
    %220 = vector.extract_strided_slice %217 {offsets = [0, 8], sizes = [16, 8], strides = [1, 1]} : vector<16x32xf32> to vector<16x8xf32>
    %221 = vector.shape_cast %220 : vector<16x8xf32> to vector<2x8x8xf32>
    %222 = vector.extract_strided_slice %217 {offsets = [0, 16], sizes = [16, 8], strides = [1, 1]} : vector<16x32xf32> to vector<16x8xf32>
    %223 = vector.shape_cast %222 : vector<16x8xf32> to vector<2x8x8xf32>
    %224 = vector.extract_strided_slice %217 {offsets = [0, 24], sizes = [16, 8], strides = [1, 1]} : vector<16x32xf32> to vector<16x8xf32>
    %225 = vector.shape_cast %224 : vector<16x8xf32> to vector<2x8x8xf32>
    %226 = tpu.concatenate %219, %221, %223, %225 in 0 : vector<2x8x8xf32>, vector<2x8x8xf32>, vector<2x8x8xf32>, vector<2x8x8xf32> -> vector<8x8x8xf32>
    %227 = vector.extract_strided_slice %206 {offsets = [0, 64], sizes = [16, 32], strides = [1, 1]} : vector<16x96xf32> to vector<16x32xf32>
    %228 = vector.extract_strided_slice %227 {offsets = [0, 0], sizes = [16, 8], strides = [1, 1]} : vector<16x32xf32> to vector<16x8xf32>
    %229 = vector.shape_cast %228 : vector<16x8xf32> to vector<2x8x8xf32>
    %230 = vector.extract_strided_slice %227 {offsets = [0, 8], sizes = [16, 8], strides = [1, 1]} : vector<16x32xf32> to vector<16x8xf32>
    %231 = vector.shape_cast %230 : vector<16x8xf32> to vector<2x8x8xf32>
    %232 = vector.extract_strided_slice %227 {offsets = [0, 16], sizes = [16, 8], strides = [1, 1]} : vector<16x32xf32> to vector<16x8xf32>
    %233 = vector.shape_cast %232 : vector<16x8xf32> to vector<2x8x8xf32>
    %234 = vector.extract_strided_slice %227 {offsets = [0, 24], sizes = [16, 8], strides = [1, 1]} : vector<16x32xf32> to vector<16x8xf32>
    %235 = vector.shape_cast %234 : vector<16x8xf32> to vector<2x8x8xf32>
    %236 = tpu.concatenate %229, %231, %233, %235 in 0 : vector<2x8x8xf32>, vector<2x8x8xf32>, vector<2x8x8xf32>, vector<2x8x8xf32> -> vector<8x8x8xf32>
    %237 = arith.truncf %216 : vector<8x8x8xf32> to vector<8x8x8xbf16>
    %238 = arith.truncf %226 : vector<8x8x8xf32> to vector<8x8x8xbf16>
    "tpu.trace_start"() <{level = 10 : i32, message = "bqd,bkd->bqk"}> : () -> ()
    %cst_56 = arith.constant dense<0.000000e+00> : vector<8x8x8xf32>
    %239 = tpu.matmul %237, %238, %cst_56 {dimension_numbers = #tpu.dot_dimension_numbers<[2], [2], [1], [1], [0, 0, 0, 1, 1, 1], [0], [0]>} : vector<8x8x8xbf16>, vector<8x8x8xbf16>, vector<8x8x8xf32> -> vector<8x8x8xf32>
    "tpu.trace_stop"() : () -> ()
    %240 = vector.broadcast %51 : vector<8x1x8xf32> to vector<8x8x8xf32>
    %241 = arith.addf %239, %240 : vector<8x8x8xf32>
    %cst_57 = arith.constant dense<0xFF800000> : vector<8x8xf32>
    %242 = vector.multi_reduction <maximumf>, %241, %cst_57 [2] : vector<8x8x8xf32> to vector<8x8xf32>
    %243 = vector.shape_cast %242 : vector<8x8xf32> to vector<8x8x1xf32>
    %244 = vector.broadcast %243 : vector<8x8x1xf32> to vector<8x8x8xf32>
    %245 = arith.subf %241, %244 : vector<8x8x8xf32>
    %246 = math.exp %245 : vector<8x8x8xf32>
    %cst_58 = arith.constant dense<0.000000e+00> : vector<8x8xf32>
    %247 = vector.multi_reduction <add>, %246, %cst_58 [2] : vector<8x8x8xf32> to vector<8x8xf32>
    %248 = vector.shape_cast %247 : vector<8x8xf32> to vector<8x8x1xf32>
    %249 = tpu.reciprocal %248 {approx = true} : vector<8x8x1xf32> -> vector<8x8x1xf32>
    %250 = vector.broadcast %249 : vector<8x8x1xf32> to vector<8x8x8xf32>
    %251 = arith.mulf %246, %250 : vector<8x8x8xf32>
    %252 = arith.truncf %251 : vector<8x8x8xf32> to vector<8x8x8xbf16>
    %253 = arith.truncf %236 : vector<8x8x8xf32> to vector<8x8x8xbf16>
    "tpu.trace_start"() <{level = 10 : i32, message = "bqk,bkd->bqd"}> : () -> ()
    %cst_59 = arith.constant dense<0.000000e+00> : vector<8x8x8xf32>
    %254 = tpu.matmul %252, %253, %cst_59 {dimension_numbers = #tpu.dot_dimension_numbers<[2], [1], [1], [2], [0, 0, 0, 1, 1, 2], [0], [0]>} : vector<8x8x8xbf16>, vector<8x8x8xbf16>, vector<8x8x8xf32> -> vector<8x8x8xf32>
    "tpu.trace_stop"() : () -> ()
    %255 = vector.extract_strided_slice %254 {offsets = [0, 0, 0], sizes = [2, 8, 8], strides = [1, 1, 1]} : vector<8x8x8xf32> to vector<2x8x8xf32>
    %256 = vector.shape_cast %255 : vector<2x8x8xf32> to vector<16x8xf32>
    %257 = vector.extract_strided_slice %254 {offsets = [2, 0, 0], sizes = [2, 8, 8], strides = [1, 1, 1]} : vector<8x8x8xf32> to vector<2x8x8xf32>
    %258 = vector.shape_cast %257 : vector<2x8x8xf32> to vector<16x8xf32>
    %259 = vector.extract_strided_slice %254 {offsets = [4, 0, 0], sizes = [2, 8, 8], strides = [1, 1, 1]} : vector<8x8x8xf32> to vector<2x8x8xf32>
    %260 = vector.shape_cast %259 : vector<2x8x8xf32> to vector<16x8xf32>
    %261 = vector.extract_strided_slice %254 {offsets = [6, 0, 0], sizes = [2, 8, 8], strides = [1, 1, 1]} : vector<8x8x8xf32> to vector<2x8x8xf32>
    %262 = vector.shape_cast %261 : vector<2x8x8xf32> to vector<16x8xf32>
    %263 = tpu.concatenate %256, %258, %260, %262 in 1 : vector<16x8xf32>, vector<16x8xf32>, vector<16x8xf32>, vector<16x8xf32> -> vector<16x32xf32>
    %264 = arith.truncf %263 : vector<16x32xf32> to vector<16x32xbf16>
    %c1_60 = arith.constant 1 : index
    %c0_61 = arith.constant 0 : index
    %c0_62 = arith.constant 0 : index
    %265 = vector.load %arg5[%c1_60, %c0_61, %c0_62] : memref<2x32x32xbf16, #tpu.memory_space<vmem>>, vector<1x32x32xbf16>
    %266 = vector.shape_cast %265 : vector<1x32x32xbf16> to vector<32x32xbf16>
    %cst_63 = arith.constant dense<0.000000e+00> : vector<16x32xf32>
    %267 = tpu.matmul %264, %266, %cst_63 {dimension_numbers = #tpu.dot_dimension_numbers<[1], [0], [0], [1], [0, 0, 1, 1], [], []>} : vector<16x32xbf16>, vector<32x32xbf16>, vector<16x32xf32> -> vector<16x32xf32>
    %268 = vector.extract_strided_slice %0 {offsets = [9, 0], sizes = [1, 32], strides = [1, 1]} : vector<20x128xf32> to vector<1x32xf32>
    %269 = vector.broadcast %268 : vector<1x32xf32> to vector<16x32xf32>
    %270 = arith.addf %267, %269 : vector<16x32xf32>
    %271 = arith.addf %270, %199 : vector<16x32xf32>
    %272 = vector.extract_strided_slice %0 {offsets = [10, 0], sizes = [1, 32], strides = [1, 1]} : vector<20x128xf32> to vector<1x32xf32>
    %273 = vector.extract_strided_slice %0 {offsets = [11, 0], sizes = [1, 32], strides = [1, 1]} : vector<20x128xf32> to vector<1x32xf32>
    %cst_64 = arith.constant dense<0.000000e+00> : vector<16xf32>
    %274 = vector.multi_reduction <add>, %271, %cst_64 [1] : vector<16x32xf32> to vector<16xf32>
    %275 = vector.shape_cast %274 : vector<16xf32> to vector<16x1xf32>
    %cst_65 = arith.constant 3.200000e+01 : f32
    %276 = vector.broadcast %cst_65 : f32 to vector<16x1xf32>
    %277 = arith.divf %275, %276 : vector<16x1xf32>
    %278 = vector.broadcast %277 : vector<16x1xf32> to vector<16x32xf32>
    %279 = arith.subf %271, %278 : vector<16x32xf32>
    %280 = arith.mulf %279, %279 : vector<16x32xf32>
    %cst_66 = arith.constant dense<0.000000e+00> : vector<16xf32>
    %281 = vector.multi_reduction <add>, %280, %cst_66 [1] : vector<16x32xf32> to vector<16xf32>
    %282 = vector.shape_cast %281 : vector<16xf32> to vector<16x1xf32>
    %cst_67 = arith.constant 3.200000e+01 : f32
    %283 = vector.broadcast %cst_67 : f32 to vector<16x1xf32>
    %284 = arith.divf %282, %283 : vector<16x1xf32>
    %285 = vector.broadcast %277 : vector<16x1xf32> to vector<16x32xf32>
    %286 = arith.subf %271, %285 : vector<16x32xf32>
    %cst_68 = arith.constant 9.99999996E-13 : f32
    %287 = vector.broadcast %cst_68 : f32 to vector<16x1xf32>
    %288 = arith.addf %284, %287 : vector<16x1xf32>
    %289 = math.rsqrt %288 : vector<16x1xf32>
    %290 = vector.broadcast %289 : vector<16x1xf32> to vector<16x32xf32>
    %291 = arith.mulf %286, %290 : vector<16x32xf32>
    %292 = vector.broadcast %272 : vector<1x32xf32> to vector<16x32xf32>
    %293 = arith.mulf %291, %292 : vector<16x32xf32>
    %294 = vector.broadcast %273 : vector<1x32xf32> to vector<16x32xf32>
    %295 = arith.addf %293, %294 : vector<16x32xf32>
    %296 = arith.truncf %295 : vector<16x32xf32> to vector<16x32xbf16>
    %c1_69 = arith.constant 1 : index
    %c0_70 = arith.constant 0 : index
    %c0_71 = arith.constant 0 : index
    %297 = vector.load %arg6[%c1_69, %c0_70, %c0_71] : memref<2x32x64xbf16, #tpu.memory_space<vmem>>, vector<1x32x64xbf16>
    %298 = vector.shape_cast %297 : vector<1x32x64xbf16> to vector<32x64xbf16>
    %cst_72 = arith.constant dense<0.000000e+00> : vector<16x64xf32>
    %299 = tpu.matmul %296, %298, %cst_72 {dimension_numbers = #tpu.dot_dimension_numbers<[1], [0], [0], [1], [0, 0, 1, 1], [], []>} : vector<16x32xbf16>, vector<32x64xbf16>, vector<16x64xf32> -> vector<16x64xf32>
    %300 = vector.extract_strided_slice %0 {offsets = [12, 0], sizes = [1, 64], strides = [1, 1]} : vector<20x128xf32> to vector<1x64xf32>
    %301 = vector.broadcast %300 : vector<1x64xf32> to vector<16x64xf32>
    %302 = arith.addf %299, %301 : vector<16x64xf32>
    %cst_73 = arith.constant 5.000000e-01 : f32
    %303 = vector.broadcast %cst_73 : f32 to vector<16x64xf32>
    %304 = arith.mulf %303, %302 : vector<16x64xf32>
    %cst_74 = arith.constant 4.471500e-02 : f32
    %305 = vector.broadcast %cst_74 : f32 to vector<16x64xf32>
    %306 = arith.mulf %305, %302 : vector<16x64xf32>
    %307 = arith.mulf %306, %302 : vector<16x64xf32>
    %308 = arith.mulf %307, %302 : vector<16x64xf32>
    %309 = arith.addf %302, %308 : vector<16x64xf32>
    %cst_75 = arith.constant 0.797884583 : f32
    %310 = vector.broadcast %cst_75 : f32 to vector<16x64xf32>
    %311 = arith.mulf %310, %309 : vector<16x64xf32>
    %312 = math.tanh %311 : vector<16x64xf32>
    %cst_76 = arith.constant 1.000000e+00 : f32
    %313 = vector.broadcast %cst_76 : f32 to vector<16x64xf32>
    %314 = arith.addf %313, %312 : vector<16x64xf32>
    %315 = arith.mulf %304, %314 : vector<16x64xf32>
    %316 = arith.truncf %315 : vector<16x64xf32> to vector<16x64xbf16>
    %c1_77 = arith.constant 1 : index
    %c0_78 = arith.constant 0 : index
    %c0_79 = arith.constant 0 : index
    %317 = vector.load %arg7[%c1_77, %c0_78, %c0_79] : memref<2x64x32xbf16, #tpu.memory_space<vmem>>, vector<1x64x32xbf16>
    %318 = vector.shape_cast %317 : vector<1x64x32xbf16> to vector<64x32xbf16>
    %cst_80 = arith.constant dense<0.000000e+00> : vector<16x32xf32>
    %319 = tpu.matmul %316, %318, %cst_80 {dimension_numbers = #tpu.dot_dimension_numbers<[1], [0], [0], [1], [0, 0, 1, 1], [], []>} : vector<16x64xbf16>, vector<64x32xbf16>, vector<16x32xf32> -> vector<16x32xf32>
    %320 = vector.extract_strided_slice %0 {offsets = [13, 0], sizes = [1, 32], strides = [1, 1]} : vector<20x128xf32> to vector<1x32xf32>
    %321 = vector.broadcast %320 : vector<1x32xf32> to vector<16x32xf32>
    %322 = arith.addf %319, %321 : vector<16x32xf32>
    %323 = arith.addf %322, %295 : vector<16x32xf32>
    %324 = vector.extract_strided_slice %0 {offsets = [14, 0], sizes = [1, 32], strides = [1, 1]} : vector<20x128xf32> to vector<1x32xf32>
    %325 = vector.extract_strided_slice %0 {offsets = [15, 0], sizes = [1, 32], strides = [1, 1]} : vector<20x128xf32> to vector<1x32xf32>
    %cst_81 = arith.constant dense<0.000000e+00> : vector<16xf32>
    %326 = vector.multi_reduction <add>, %323, %cst_81 [1] : vector<16x32xf32> to vector<16xf32>
    %327 = vector.shape_cast %326 : vector<16xf32> to vector<16x1xf32>
    %cst_82 = arith.constant 3.200000e+01 : f32
    %328 = vector.broadcast %cst_82 : f32 to vector<16x1xf32>
    %329 = arith.divf %327, %328 : vector<16x1xf32>
    %330 = vector.broadcast %329 : vector<16x1xf32> to vector<16x32xf32>
    %331 = arith.subf %323, %330 : vector<16x32xf32>
    %332 = arith.mulf %331, %331 : vector<16x32xf32>
    %cst_83 = arith.constant dense<0.000000e+00> : vector<16xf32>
    %333 = vector.multi_reduction <add>, %332, %cst_83 [1] : vector<16x32xf32> to vector<16xf32>
    %334 = vector.shape_cast %333 : vector<16xf32> to vector<16x1xf32>
    %cst_84 = arith.constant 3.200000e+01 : f32
    %335 = vector.broadcast %cst_84 : f32 to vector<16x1xf32>
    %336 = arith.divf %334, %335 : vector<16x1xf32>
    %337 = vector.broadcast %329 : vector<16x1xf32> to vector<16x32xf32>
    %338 = arith.subf %323, %337 : vector<16x32xf32>
    %cst_85 = arith.constant 9.99999996E-13 : f32
    %339 = vector.broadcast %cst_85 : f32 to vector<16x1xf32>
    %340 = arith.addf %336, %339 : vector<16x1xf32>
    %341 = math.rsqrt %340 : vector<16x1xf32>
    %342 = vector.broadcast %341 : vector<16x1xf32> to vector<16x32xf32>
    %343 = arith.mulf %338, %342 : vector<16x32xf32>
    %344 = vector.broadcast %324 : vector<1x32xf32> to vector<16x32xf32>
    %345 = arith.mulf %343, %344 : vector<16x32xf32>
    %346 = vector.broadcast %325 : vector<1x32xf32> to vector<16x32xf32>
    %347 = arith.addf %345, %346 : vector<16x32xf32>
    %348 = vector.shape_cast %347 : vector<16x32xf32> to vector<2x8x32xf32>
    %349 = vector.extract_strided_slice %348 {offsets = [0, 0, 0], sizes = [2, 1, 32], strides = [1, 1, 1]} : vector<2x8x32xf32> to vector<2x1x32xf32>
    %350 = vector.shape_cast %349 : vector<2x1x32xf32> to vector<2x32xf32>
    %c0_86 = arith.constant 0 : index
    %c0_87 = arith.constant 0 : index
    %351 = vector.load %arg8[%c0_86, %c0_87] : memref<32x160xbf16, #tpu.memory_space<vmem>>, vector<32x128xbf16>
    %c0_88 = arith.constant 0 : index
    %c128 = arith.constant 128 : index
    %352 = vector.load %arg8[%c0_88, %c128] : memref<32x160xbf16, #tpu.memory_space<vmem>>, vector<32x32xbf16>
    %353 = arith.truncf %350 : vector<2x32xf32> to vector<2x32xbf16>
    %cst_89 = arith.constant dense<0.000000e+00> : vector<2x32xf32>
    %354 = tpu.matmul %353, %352, %cst_89 {dimension_numbers = #tpu.dot_dimension_numbers<[1], [0], [0], [1], [0, 0, 1, 1], [], []>} : vector<2x32xbf16>, vector<32x32xbf16>, vector<2x32xf32> -> vector<2x32xf32>
    %355 = vector.extract_strided_slice %0 {offsets = [18, 0], sizes = [1, 32], strides = [1, 1]} : vector<20x128xf32> to vector<1x32xf32>
    %356 = vector.broadcast %355 : vector<1x32xf32> to vector<2x32xf32>
    %357 = arith.addf %354, %356 : vector<2x32xf32>
    %358 = math.tanh %357 : vector<2x32xf32>
    %359 = arith.truncf %358 : vector<2x32xf32> to vector<2x32xbf16>
    %cst_90 = arith.constant dense<0.000000e+00> : vector<2x128xf32>
    %360 = tpu.matmul %359, %351, %cst_90 {dimension_numbers = #tpu.dot_dimension_numbers<[1], [0], [0], [1], [0, 0, 1, 1], [], []>} : vector<2x32xbf16>, vector<32x128xbf16>, vector<2x128xf32> -> vector<2x128xf32>
    %361 = vector.extract_strided_slice %0 {offsets = [19, 0], sizes = [1, 128], strides = [1, 1]} : vector<20x128xf32> to vector<1x128xf32>
    %362 = vector.broadcast %361 : vector<1x128xf32> to vector<2x128xf32>
    %363 = arith.addf %360, %362 : vector<2x128xf32>
    %c0_91 = arith.constant 0 : index
    %c0_92 = arith.constant 0 : index
    %364 = vector.load %arg9[%c0_91, %c0_92] : memref<2x128xf32, #tpu.memory_space<vmem>>, vector<2x128xf32>
    tpu.vector_store %arg9[%c0_91, %c0_92], %363 {strides = array<i32>} : memref<2x128xf32, #tpu.memory_space<vmem>>, vector<2x128xf32>,
    return
  }
}

</mosaic_0001>

<bundles_post_ra>
// kernel: bert_model_forward.1
= control target key start
LH: loop header
LB: loop body
LE: loop exit
PB: predicated region body
PF: predicated region fallthrough
CT: control target
= control target key end

     0   :  { %v3832_v1 = vmov 1   ;;  %v3833_v2 = vmov 0   ;;  %v3834_v4 = vmov 0.0   ;;  %s4597_s0 = inlined_call_operand.vmem [shape: s32[16,2], index: 0, kind: input, shape index: {}]   ;;  %s4598_s1 = inlined_call_operand.vmem [shape: f32[2,8], index: 1, kind: input, shape index: {}]   ;;  %s4599_s2 = inlined_call_operand.vmem [shape: f32[88,32], index: 2, kind: input, shape index: {}]   ;;  %s4600_s3 = inlined_call_operand.vmem [shape: f32[20,128], index: 3, kind: input, shape index: {}]   ;;  %s4601_s4 = inlined_call_operand.vmem [shape: bf16[2,32,96], index: 4, kind: input, shape index: {}]   ;;  %s4602_s5 = inlined_call_operand.vmem [shape: bf16[2,32,32], index: 5, kind: input, shape index: {}]   ;;  %s4603_s6 = inlined_call_operand.vmem [shape: bf16[2,32,64], index: 6, kind: input, shape index: {}]   ;;  %s4604_s7 = inlined_call_operand.vmem [shape: bf16[2,64,32], index: 7, kind: input, shape index: {}]   ;;  %s4605_s8 = inlined_call_operand.vmem [shape: bf16[32,160], index: 8, kind: input, shape index: {}]   ;;  %s4606_s9 = inlined_call_operand.hbm [shape: f32[2,128], index: 9, kind: output, shape index: {}]  }
   0x1   :  { %v37_v0 = vld [vmem:[%s4597_s0] sm:$0xff]  ;;  %3626 = vset.pattern.permute.xlu0 %v3832_v1  ;;  %3627 = vset.pattern.permute.xlu1 %v3833_v2  ;;  %v38_v3 = vld [vmem:[%s4597_s0 + $0x8] sm:$0xff] }
   0x2   :  { %54 = vperm.xlu0 %3626, %v37_v0   ;;  %42 = vperm.xlu1 %3627, %v37_v0   ;;  %v73_v5 = vld [vmem:[%s4599_s2 + $0x40] sm:$0xff]  ;;  %v66_v7 = vld [vmem:[%s4599_s2 + $0x8] sm:$0xff] }
   0x3   :  { %3314 = vmatprep.subr.bf16.mxu1 %v3834_v4  ;;  %v65_v6 = vld [vmem:[%s4599_s2] sm:$0xff]  ;;  %3290 = vmatprep.subr.mxu0 %v73_v5 }
   0x4   :  { %v3594_v8 = vpack.c.bf16 %v66_v7, %v65_v6  ;;  %3291 = vmatpush3.msra.mxu0 %v73_v5 }
   0x6   :  { %57 = vperm.xlu0 %3626, %v38_v3   ;;  %45 = vperm.xlu1 %3627, %v38_v3  }
   0x7   :  { %3595 = vmatprep.subr.bf16.mxu0 %v3594_v8 }
   0x8   :  { %14 = vsyncpa [#allocation3], 0  ;;  %v39_v9 = vlaneseq  ;;  %vm75_vm0 = vcmask 64512   ;;  %v67_v14 = vld [vmem:[%s4599_s2 + $0x10] sm:$0xff]  ;;  %v68_v15 = vld [vmem:[%s4599_s2 + $0x18] sm:$0xff]  ;;  %vm157_vm4 = vcmask 523264  }
   0x9   :  { %v3598_v17 = vpack.c.bf16 %v68_v15, %v67_v14  ;;  %v69_v20 = vld [vmem:[%s4599_s2 + $0x20] sm:$0xff]  ;;  %v70_v21 = vld [vmem:[%s4599_s2 + $0x28] sm:$0xff]  ;;  %v71_v23 = vld [vmem:[%s4599_s2 + $0x30] sm:$0xff]  ;;  %vm241_vm6 = vcmask 261120   ;;  %vm3835_vm7 = vmmov 0   ;;  %s3836_s18 = smov 112  }
   0xa   :  { %v40_v10 = vand.u32 127, %v39_v9  ;;  %v3602_v22 = vpack.c.bf16 %v70_v21, %v69_v20  ;;  %v72_v24 = vld [vmem:[%s4599_s2 + $0x38] sm:$0xff]  ;;  %v74_v28 = vld [vmem:[%s4599_s2 + $0x48] sm:$0xff]  ;;  %v3688_v45 = vld [vmem:[%s4601_s4] sm:$0xff]   ;;  %3318 = vmatprep.mubr.msk.bf16.mxu1 %vm3835_vm7, %v3834_v4  ;;  %v3960_v53 = vshrl.u32 %v39_v9, 7  ;;  %s3837_s0 = smov 120  }
   0xb   :  { %v3606_v25 = vpack.c.bf16 %v72_v24, %v71_v23  ;;  %3315 = vmatpush3.bf16.msra.mxu1 %v3688_v45  ;;  %v3689_v46 = vld [vmem:[%s4601_s4 + $0x8] sm:$0xff]   ;;  %v36_v55 = vld [vmem:[%s4600_s3 + $0x10] sm:$0xf]  ;;  %v3985_v5 = vld [vmem:[%s4600_s3] sm:$0xff]  ;;  %s3838_s19 = smov 96   ;;  %s3839_s20 = smov 104  }
   0xc   :  { %3316 = vmatprep.subr.bf16.mxu1 %v3834_v4  ;;  %v3963_v54 = vsub.s32 0, %v3960_v53  ;;  %v3970_v59 = vsub.s32 1, %v3960_v53  ;;  %s3840_s21 = smov 64   ;;  %vm903_vm8 = vcmask 1043456   ;;  %s3843_s28 = smov 16   ;;  %vm1309_vm9 = vcmask 130048  }
   0xd   :  { %s3844_s29 = smov 24   ;;  %vm1312_vm10 = vcmask 195584   ;;  %vm2951_vm11 = vcmask 1041409  }
   0xe   :  { %v272_v58 = vrot.slane %v36_v55, %v3963_v54  ;;  %v278_v63 = vrot.slane %v36_v55, %v3970_v59  ;;  %v315_v6 = vrot.slane %v3985_v5, %v3963_v54  ;;  %v281_v55 = vld [vmem:[%s4598_s1] sm:$0x3]  ;;  %s3842_s1 = smov 8  }
   0xf   :  { %3317 = vmatpush3.bf16.msra.mxu1 %v3689_v46 }
  0x10   :  { %3322 = vmatprep.subr.bf16.mxu1 %v3834_v4 }
  0x81   :  { %v55_v11 = vpop.permute.xlu0 %54  ;;  %v43_v12 = vpop.permute.xlu1 %42 }
  0x82   :  { %vm59_vm1 = vcmp.eq.s32.totalorder %v40_v10, %v55_v11  ;;  %vm47_vm2 = vcmp.eq.s32.totalorder %v40_v10, %v43_v12 }
  0x83   :  { %v3087_v13 = vsel %vm59_vm1, 1.0, %v3834_v4  ;;  %v3085_v18 = vsel %vm47_vm2, 1.0, %v3834_v4 }
  0x84   :  { %3292 = vmatprep.mubr.msk.f32.mxu0 %vm75_vm0, %v3087_v13 }
  0x85   :  { %v58_v16 = vpop.permute.xlu0 %57  ;;  %v46_v26 = vpop.permute.xlu1 %45 }
  0x86   :  { %vm60_vm3 = vcmp.eq.s32.totalorder %v40_v10, %v58_v16  ;;  %vm48_vm5 = vcmp.eq.s32.totalorder %v40_v10, %v46_v26 }
  0x87   :  { %v3088_v19 = vsel %vm60_vm3, 1.0, %v3834_v4  ;;  %v3086_v27 = vsel %vm48_vm5, 1.0, %v3834_v4 }
  0x88   :  { %3293 = vmatmul.mubr.msk.f32.vlgmr.msra.gmra.mrb[0].mxu0 %vm75_vm0, %v3088_v19 }
  0x89   :  { %3597 = vmatpush3.bf16.msra.mxu0 %v3594_v8  ;;  %3311 = vmatprep.mubr.msk.f32.mxu0 %vm157_vm4, %v3085_v18 }
  0x8a   :  { %3599 = vmatprep.subr.bf16.mxu0 %v3598_v17 }
  0x8d   :  { %3601 = vmatpush3.bf16.msra.mxu0 %v3598_v17 }
  0x8e   :  { %3603 = vmatprep.subr.bf16.mxu0 %v3602_v22 }
  0x91   :  { %3605 = vmatpush3.bf16.msra.mxu0 %v3602_v22 }
  0x92   :  { %3607 = vmatprep.subr.bf16.mxu0 %v3606_v25 }
  0x95   :  { %3609 = vmatpush3.bf16.msra.mxu0 %v3606_v25 }
  0x96   :  { %3334 = vmatprep.subr.bf16.mxu0 %v3834_v4 }
  0x98   :  { %3312 = vmatmul.mubr.msk.f32.vlgmr.msra.gmra.mrb[0].mxu0 %vm157_vm4, %v3086_v27 }
  0x99   :  { %3336 = vmatprep.mubr.msk.bf16.mxu0 %vm3835_vm7, %v3834_v4 }
 0x16b   :  { %v3313_v29 = vpop.f32.mrb[0].mxu0 }
 0x16c   :  { %v240_v30 = vadd.f32 %v3313_v29, %v74_v28  ;;  %v230_v31 = vpop.f32.mrb[1].mxu0 }
 0x16d   :  { %v239_v32 = vadd.f32 %v230_v31, %v74_v28 }
 0x16e   :  { %v245_v33 = vsel %vm241_vm6, %v240_v30, 0.0 }
 0x16f   :  { %246 = vadd.xlane.f32.xlu1 %v245_v33  ;;  %v242_v34 = vsel %vm241_vm6, %v239_v32, 0.0 }
 0x170   :  { %243 = vadd.xlane.f32.xlu0 %v242_v34 }
 0x1fc   :  { %v247_v35 = vpop.xlane.xlu1 %246 }
 0x1fd   :  { %v250_v36 = vmul.f32 0.03125, %v247_v35  ;;  %v244_v37 = vpop.xlane.xlu0 %243 }
 0x1fe   :  { %v249_v38 = vmul.f32 0.03125, %v244_v37 }
 0x1ff   :  { %v252_v39 = vsub.f32 %v240_v30, %v250_v36 }
 0x200   :  { %v251_v40 = vsub.f32 %v239_v32, %v249_v38 }
 0x201   :  { %v254_v43 = vmul.f32 %v252_v39, %v252_v39 }
 0x202   :  { %v253_v41 = vmul.f32 %v251_v40, %v251_v40 }
 0x203   :  { %v258_v44 = vsel %vm241_vm6, %v254_v43, 0.0 }
 0x204   :  { %v255_v42 = vsel %vm241_vm6, %v253_v41, 0.0 }
 0x205   :  { %256 = vadd.xlane.f32.xlu0 %v255_v42 }
 0x209   :  { %259 = vadd.xlane.f32.xlu0 %v258_v44 }
 0x292   :  { %v257_v47 = vpop.xlane.xlu0 %256 }
 0x293   :  { %v261_v48 = vmul.f32 0.03125, %v257_v47 }
 0x295   :  { %v263_v49 = vadd.f32 1e-12, %v261_v48 }
 0x296   :  { %v260_v50 = vpop.xlane.xlu0 %259 }
 0x297   :  { %3712 = vrsqrt.f32 %v263_v49  ;;  %v262_v51 = vmul.f32 0.03125, %v260_v50 }
 0x299   :  { %v264_v52 = vadd.f32 1e-12, %v262_v51  ;;  %v3841_v51 = vmov 1966171168  }
 0x29b   :  { %3714 = vrsqrt.f32 %v264_v52  ;;  %v286_v52 = vunpack.c.l.s4 %v3841_v51 }
 0x2a1   :  { %v3713_v56 = vpop.eup %3712 }
 0x2a2   :  { %v267_v57 = vmul.f32 %v3713_v56, %v251_v40  ;;  %v282_v56 = vsub.f32 1.0, %v281_v55 }
 0x2a4   :  { %v273_v62 = vmul.f32 %v272_v58, %v267_v57  ;;  %v287_v57 = vunpack.c.0.s8 %v286_v52 }
 0x2a5   :  { %v3715_v60 = vpop.eup %3714 }
 0x2a6   :  { %v268_v61 = vmul.f32 %v3715_v60, %v252_v39  ;;  %v3973_v1 = vadd.f32 %v278_v63, %v273_v62  ;;  %v290_v60 = vsub.s32 %v287_v57, %v3960_v53 }
 0x2a8   :  { %v274_v0 = vmul.f32 %v272_v58, %v268_v61  ;;  %v283_v58 = vmul.f32 -10000.0, %v282_v56 }
 0x2aa   :  { %v3975_v2 = vadd.f32 %v278_v63, %v274_v0  ;;  %v291_v61 = vrot.slane %v283_v58, %v290_v60 }
 0x2ac   :  { %v307_v3 = vpack.c.bf16 %v3975_v2, %v3973_v1  ;;  %v299_v62 = vrot.slane %v291_v61, %v290_v60  ;;  %v292_v0 = vcombine.high %v291_v61, %v291_v61 }
 0x2ae   :  { %3319 = vmatmul.mubr.msk.bf16.vlgmr.msra.gmra.mrb[0].mxu1 %vm241_vm6, %v307_v3  ;;  %v4075_v63 = vrot.slane %v299_v62, %v3963_v54 }
 0x2af   :  { %3324 = vmatprep.mubr.msk.bf16.mxu1 %vm3835_vm7, %v3834_v4 }
 0x381   :  { %v365_v7 = vpop.f32.mrb[0].mxu1 }
 0x382   :  { %v3320_v8 = vpop.f32.mrb[1].mxu1  ;;  %v366_v10 = vadd.f32 %v365_v7, %v315_v6 }
 0x383   :  { %v368_v9 = vpop.f32.mrb[2].mxu1  ;;  %v306_v8 = vrot.slane %v292_v0, %v290_v60 }
 0x384   :  { %v369_v11 = vadd.f32 %v368_v9, %v315_v6  ;;  %v3321_v12 = vpop.f32.mrb[3].mxu1  ;;  %v392_v15 = vpack.c.bf16 %v366_v10, %v366_v10 }
 0x385   :  { %v4083_v12 = vrot.slane %v306_v8, %v3963_v54 }
 0x386   :  { %v3633_v13 = vpack.i.bf16 %v369_v11, %v366_v10  ;;  %v393_v14 = vpack.c.bf16 %v369_v11, %v369_v11 }
 0x388   :  { %3634 = vrot.lane.b32.xlu0 %v3633_v13, %s3836_s18  ;;  %3629 = vrot.lane.b32.xlu1 %v3633_v13, %s3837_s0 }
 0x38c   :  { %460 = vrot.lane.b32.xlu0 %v393_v14, %s3838_s19  ;;  %3639 = vrot.lane.b32.xlu1 %v3633_v13, %s3839_s20 }
 0x390   :  { %411 = vrot.lane.b32.xlu1 %v392_v15, %s3838_s19 }
 0x3fa   :  { %v3635_v16 = vpop.permute.xlu0 %3634  ;;  %v3630_v17 = vpop.permute.xlu1 %3629 }
 0x3fb   :  { %v3632_v18 = vunpack.i.h.bf16 %v3630_v17  ;;  %v3631_v19 = vunpack.i.l.bf16 %v3630_v17  ;;  %v3637_v20 = vunpack.i.h.bf16 %v3635_v16  ;;  %v3636_v21 = vunpack.i.l.bf16 %v3635_v16 }
 0x3fd   :  { %v3994_v22 = vpack.c.bf16 %v3632_v18, %v3632_v18  ;;  %v3996_v23 = vpack.c.bf16 %v3631_v19, %v3631_v19  ;;  %v4002_v25 = vpack.c.bf16 %v3637_v20, %v3637_v20  ;;  %v4004_v26 = vpack.c.bf16 %v3636_v21, %v3636_v21 }
 0x3fe   :  { %v3640_v24 = vpop.permute.xlu1 %3639  ;;  %v461_v33 = vpop.permute.xlu0 %460 }
 0x3ff   :  { %558 = vrot.lane.b32.xlu0 %v3994_v22, %s3838_s19  ;;  %509 = vrot.lane.b32.xlu1 %v3996_v23, %s3838_s19  ;;  %v3642_v27 = vunpack.i.h.bf16 %v3640_v24  ;;  %v3641_v28 = vunpack.i.l.bf16 %v3640_v24  ;;  %v466_v34 = vsel %vm75_vm0, %v461_v33, 0 }
 0x401   :  { %v4011_v31 = vpack.c.bf16 %v3642_v27, %v3642_v27  ;;  %v4013_v32 = vpack.c.bf16 %v3641_v28, %v3641_v28 }
 0x402   :  { %v412_v29 = vpop.permute.xlu1 %411 }
 0x403   :  { %v417_v30 = vsel %vm75_vm0, %v412_v29, 0  ;;  %656 = vrot.lane.b32.xlu0 %v4002_v25, %s3838_s19  ;;  %607 = vrot.lane.b32.xlu1 %v4004_v26, %s3838_s19 }
 0x404   :  { %3323 = vmatpush3.bf16.xpose.msra.mxu1 %v417_v30 }
 0x405   :  { %3328 = vmatprep.subr.bf16.mxu1 %v3834_v4 }
 0x407   :  { %754 = vrot.lane.b32.xlu0 %v4011_v31, %s3838_s19  ;;  %705 = vrot.lane.b32.xlu1 %v4013_v32, %s3838_s19 }
 0x40b   :  { %898 = vrot.lane.b32.xlu0 %v392_v15, %s3840_s21  ;;  %947 = vrot.lane.b32.xlu1 %v393_v14, %s3840_s21 }
 0x40c   :  { %3325 = vmatmul.mubr.msk.bf16.vlgmr.msra.gmra.mrb[4].mxu1 %vm75_vm0, %v392_v15 }
 0x40d   :  { %3329 = vmatpush3.bf16.xpose.msra.mxu1 %v466_v34  ;;  %3330 = vmatprep.mubr.msk.bf16.mxu1 %vm3835_vm7, %v3834_v4 }
 0x40e   :  { %3340 = vmatprep.subr.bf16.mxu1 %v3834_v4 }
 0x414   :  { %3331 = vmatmul.mubr.msk.bf16.vlgmr.msra.gmra.mrb[8].mxu1 %vm75_vm0, %v393_v14 }
 0x415   :  { %3342 = vmatprep.mubr.msk.bf16.mxu1 %vm3835_vm7, %v3834_v4 }
 0x471   :  { %v559_v35 = vpop.permute.xlu0 %558  ;;  %v510_v36 = vpop.permute.xlu1 %509 }
 0x472   :  { %v564_v37 = vsel %vm75_vm0, %v559_v35, 0  ;;  %v515_v38 = vsel %vm75_vm0, %v510_v36, 0 }
 0x473   :  { %3335 = vmatpush3.bf16.xpose.msra.mxu0 %v515_v38  ;;  %3341 = vmatpush3.bf16.xpose.msra.mxu1 %v564_v37 }
 0x474   :  { %3346 = vmatprep.subr.bf16.mxu0 %v3834_v4  ;;  %3352 = vmatprep.subr.bf16.mxu1 %v3834_v4 }
 0x475   :  { %v657_v39 = vpop.permute.xlu0 %656  ;;  %v608_v40 = vpop.permute.xlu1 %607 }
 0x476   :  { %v662_v41 = vsel %vm75_vm0, %v657_v39, 0  ;;  %v613_v42 = vsel %vm75_vm0, %v608_v40, 0 }
 0x479   :  { %v755_v43 = vpop.permute.xlu0 %754  ;;  %v706_v44 = vpop.permute.xlu1 %705 }
 0x47a   :  { %3337 = vmatmul.mubr.msk.bf16.vlgmr.msra.gmra.mrb[4].mxu0 %vm75_vm0, %v3996_v23  ;;  %3343 = vmatmul.mubr.msk.bf16.vlgmr.msra.gmra.mrb[12].mxu1 %vm75_vm0, %v3994_v22  ;;  %v760_v45 = vsel %vm75_vm0, %v755_v43, 0  ;;  %v711_v46 = vsel %vm75_vm0, %v706_v44, 0 }
 0x47b   :  { %3347 = vmatpush3.bf16.xpose.msra.mxu0 %v613_v42  ;;  %3353 = vmatpush3.bf16.xpose.msra.mxu1 %v662_v41 }
 0x47c   :  { %3348 = vmatprep.mubr.msk.bf16.mxu0 %vm3835_vm7, %v3834_v4  ;;  %3354 = vmatprep.mubr.msk.bf16.mxu1 %vm3835_vm7, %v3834_v4 }
 0x47d   :  { %3358 = vmatprep.subr.bf16.mxu0 %v3834_v4  ;;  %3364 = vmatprep.subr.bf16.mxu1 %v3834_v4  ;;  %v899_v47 = vpop.permute.xlu0 %898  ;;  %v948_v48 = vpop.permute.xlu1 %947 }
 0x47e   :  { %v905_v49 = vsel %vm903_vm8, %v899_v47, 0  ;;  %v953_v50 = vsel %vm903_vm8, %v948_v48, 0 }
 0x482   :  { %3349 = vmatmul.mubr.msk.bf16.vlgmr.msra.gmra.mrb[8].mxu0 %vm75_vm0, %v4004_v26  ;;  %3355 = vmatmul.mubr.msk.bf16.vlgmr.msra.gmra.mrb[16].mxu1 %vm75_vm0, %v4002_v25 }
 0x483   :  { %3359 = vmatpush3.bf16.xpose.msra.mxu0 %v711_v46  ;;  %3365 = vmatpush3.bf16.xpose.msra.mxu1 %v760_v45 }
 0x484   :  { %3360 = vmatprep.mubr.msk.bf16.mxu0 %vm3835_vm7, %v3834_v4  ;;  %3366 = vmatprep.mubr.msk.bf16.mxu1 %vm3835_vm7, %v3834_v4 }
 0x485   :  { %3370 = vmatprep.subr.bf16.mxu0 %v3834_v4  ;;  %3376 = vmatprep.subr.bf16.mxu1 %v3834_v4 }
 0x48a   :  { %3361 = vmatmul.mubr.msk.bf16.vlgmr.msra.gmra.mrb[12].mxu0 %vm75_vm0, %v4013_v32  ;;  %3367 = vmatmul.mubr.msk.bf16.vlgmr.msra.gmra.mrb[20].mxu1 %vm75_vm0, %v4011_v31 }
 0x48b   :  { %3371 = vmatpush3.bf16.msra.mxu0 %v905_v49  ;;  %3377 = vmatpush3.bf16.msra.mxu1 %v953_v50 }
 0x48c   :  { %3372 = vmatprep.mubr.msk.bf16.mxu0 %vm3835_vm7, %v3834_v4  ;;  %3378 = vmatprep.mubr.msk.bf16.mxu1 %vm3835_vm7, %v3834_v4 }
 0x48d   :  { %3382 = vmatprep.subr.bf16.mxu0 %v3834_v4  ;;  %3388 = vmatprep.subr.bf16.mxu1 %v3834_v4 }
 0x4df   :  { %v453_v3 = vpop.f32.mrb[4].mxu1 }
 0x4e0   :  { %v4078_v6 = vadd.f32 %v453_v3, %v4075_v63  ;;  %v3326_v7 = vpop.f32.mrb[5].mxu1 }
 0x4e1   :  { %v456_v9 = vpop.f32.mrb[6].mxu1 }
 0x4e2   :  { %v3327_v10 = vpop.f32.mrb[7].mxu1  ;;  %v802_v11 = vsel %vm75_vm0, %v4078_v6, -inf }
 0x4e3   :  { %803 = vmax.xlane.f32.xlu1 %v802_v11 }
 0x4e7   :  { %v502_v13 = vpop.f32.mrb[8].mxu1 }
 0x4e8   :  { %v503_v14 = vadd.f32 %v502_v13, %v4083_v12  ;;  %v3332_v15 = vpop.f32.mrb[9].mxu1 }
 0x4e9   :  { %v505_v16 = vpop.f32.mrb[10].mxu1 }
 0x4ea   :  { %v3333_v17 = vpop.f32.mrb[11].mxu1  ;;  %v805_v18 = vsel %vm75_vm0, %v503_v14, -inf }
 0x4eb   :  { %806 = vmax.xlane.f32.xlu0 %v805_v18 }
 0x54d   :  { %v551_v19 = vpop.f32.mrb[4].mxu0  ;;  %v600_v20 = vpop.f32.mrb[12].mxu1 }
 0x54e   :  { %v552_v21 = vadd.f32 %v551_v19, %v4075_v63  ;;  %v601_v24 = vadd.f32 %v600_v20, %v4083_v12  ;;  %v3338_v27 = vpop.f32.mrb[5].mxu0  ;;  %v3344_v28 = vpop.f32.mrb[13].mxu1 }
 0x54f   :  { %v554_v29 = vpop.f32.mrb[6].mxu0  ;;  %v603_v30 = vpop.f32.mrb[14].mxu1 }
 0x550   :  { %v3339_v33 = vpop.f32.mrb[7].mxu0  ;;  %v3345_v34 = vpop.f32.mrb[15].mxu1  ;;  %v811_v35 = vsel %vm75_vm0, %v601_v24, -inf  ;;  %v808_v36 = vsel %vm75_vm0, %v552_v21, -inf }
 0x551   :  { %812 = vmax.xlane.f32.xlu1 %v811_v35  ;;  %809 = vmax.xlane.f32.xlu0 %v808_v36 }
 0x555   :  { %v649_v37 = vpop.f32.mrb[8].mxu0  ;;  %v698_v38 = vpop.f32.mrb[16].mxu1 }
 0x556   :  { %v4092_v39 = vadd.f32 %v649_v37, %v4075_v63  ;;  %v699_v40 = vadd.f32 %v698_v38, %v4083_v12  ;;  %v3350_v41 = vpop.f32.mrb[9].mxu0  ;;  %v3356_v42 = vpop.f32.mrb[17].mxu1 }
 0x557   :  { %v652_v43 = vpop.f32.mrb[10].mxu0  ;;  %v701_v44 = vpop.f32.mrb[18].mxu1 }
 0x558   :  { %v3351_v45 = vpop.f32.mrb[11].mxu0  ;;  %v3357_v46 = vpop.f32.mrb[19].mxu1  ;;  %v817_v47 = vsel %vm75_vm0, %v699_v40, -inf  ;;  %v814_v48 = vsel %vm75_vm0, %v4092_v39, -inf }
 0x559   :  { %818 = vmax.xlane.f32.xlu1 %v817_v47  ;;  %815 = vmax.xlane.f32.xlu0 %v814_v48 }
 0x55d   :  { %v747_v49 = vpop.f32.mrb[12].mxu0  ;;  %v796_v50 = vpop.f32.mrb[20].mxu1 }
 0x55e   :  { %v4099_v51 = vadd.f32 %v747_v49, %v4075_v63  ;;  %v797_v52 = vadd.f32 %v796_v50, %v4083_v12  ;;  %v3362_v55 = vpop.f32.mrb[13].mxu0  ;;  %v3368_v56 = vpop.f32.mrb[21].mxu1 }
 0x55f   :  { %v750_v57 = vpop.f32.mrb[14].mxu0  ;;  %v799_v58 = vpop.f32.mrb[22].mxu1 }
 0x560   :  { %v3363_v60 = vpop.f32.mrb[15].mxu0  ;;  %v3369_v61 = vpop.f32.mrb[23].mxu1  ;;  %v823_v62 = vsel %vm75_vm0, %v797_v52, -inf  ;;  %v820_v0 = vsel %vm75_vm0, %v4099_v51, -inf }
 0x561   :  { %824 = vmax.xlane.f32.xlu1 %v823_v62  ;;  %821 = vmax.xlane.f32.xlu0 %v820_v0 }
 0x570   :  { %v804_v3 = vpop.xlane.xlu1 %803 }
 0x571   :  { %v826_v8 = vsub.f32 %v4078_v6, %v804_v3 }
 0x572   :  { %995 = vrot.lane.b32.xlu1 %v3996_v23, %s3840_s21 }
 0x573   :  { %v834_v10 = vmul.f32 1.442695, %v826_v8 }
 0x575   :  { %3716 = vpow2.f32 %v834_v10 }
 0x577   :  { %1043 = vrot.lane.b32.xlu0 %v3994_v22, %s3840_s21 }
 0x578   :  { %v807_v7 = vpop.xlane.xlu0 %806 }
 0x579   :  { %v827_v9 = vsub.f32 %v503_v14, %v807_v7 }
 0x57b   :  { %v836_v11 = vmul.f32 1.442695, %v827_v9 }
 0x57d   :  { %3718 = vpow2.f32 %v836_v11 }
 0x57f   :  { %v3717_v13 = vpop.eup %3716 }
 0x580   :  { %v850_v17 = vsel %vm75_vm0, %v3717_v13, 0.0 }
 0x587   :  { %v3719_v15 = vpop.eup %3718 }
 0x588   :  { %v853_v16 = vsel %vm75_vm0, %v3719_v15, 0.0 }
 0x596   :  { %854 = vadd.xlane.f32.xlu1 %v853_v16  ;;  %851 = vadd.xlane.f32.xlu0 %v850_v17 }
 0x5a7   :  { %1091 = vrot.lane.b32.xlu1 %v4004_v26, %s3840_s21 }
 0x5de   :  { %v810_v22 = vpop.xlane.xlu0 %809  ;;  %v813_v23 = vpop.xlane.xlu1 %812 }
 0x5df   :  { %v828_v18 = vsub.f32 %v552_v21, %v810_v22  ;;  %v829_v6 = vsub.f32 %v601_v24, %v813_v23 }
 0x5e1   :  { %v838_v14 = vmul.f32 1.442695, %v828_v18  ;;  %v840_v19 = vmul.f32 1.442695, %v829_v6 }
 0x5e3   :  { %3720 = vpow2.f32 %v838_v14 }
 0x5e4   :  { %3722 = vpow2.f32 %v840_v19 }
 0x5e6   :  { %v819_v20 = vpop.xlane.xlu1 %818 }
 0x5e7   :  { %v831_v27 = vsub.f32 %v699_v40, %v819_v20  ;;  %v816_v40 = vpop.xlane.xlu0 %815 }
 0x5e8   :  { %v830_v41 = vsub.f32 %v4092_v39, %v816_v40 }
 0x5e9   :  { %v844_v28 = vmul.f32 1.442695, %v831_v27 }
 0x5ea   :  { %v842_v43 = vmul.f32 1.442695, %v830_v41 }
 0x5eb   :  { %3724 = vpow2.f32 %v844_v28 }
 0x5ed   :  { %v4114_v29 = vpop.eup %3720 }
 0x5ee   :  { %v4116_v30 = vpop.eup %3722  ;;  %v825_v33 = vpop.xlane.xlu1 %824  ;;  %v856_v26 = vsel %vm75_vm0, %v4114_v29, 0.0 }
 0x5ef   :  { %v833_v34 = vsub.f32 %v797_v52, %v825_v33  ;;  %857 = vadd.xlane.f32.xlu0 %v856_v26  ;;  %v859_v21 = vsel %vm75_vm0, %v4116_v30, 0.0  ;;  %v822_v42 = vpop.xlane.xlu0 %821 }
 0x5f0   :  { %860 = vadd.xlane.f32.xlu1 %v859_v21  ;;  %v832_v44 = vsub.f32 %v4099_v51, %v822_v42 }
 0x5f1   :  { %v848_v24 = vmul.f32 1.442695, %v833_v34 }
 0x5f2   :  { %v846_v45 = vmul.f32 1.442695, %v832_v44  ;;  %v996_v47 = vpop.permute.xlu1 %995 }
 0x5f3   :  { %3726 = vpow2.f32 %v848_v24  ;;  %v1044_v46 = vpop.permute.xlu0 %1043  ;;  %v1001_v60 = vsel %vm903_vm8, %v996_v47, 0 }
 0x5f4   :  { %3728 = vpow2.f32 %v842_v43  ;;  %v1049_v61 = vsel %vm903_vm8, %v1044_v46, 0 }
 0x5f5   :  { %v4122_v35 = vpop.eup %3724  ;;  %3730 = vpow2.f32 %v846_v45 }
 0x5f6   :  { %v865_v36 = vsel %vm75_vm0, %v4122_v35, 0.0 }
 0x5f7   :  { %866 = vadd.xlane.f32.xlu1 %v865_v36 }
 0x5fd   :  { %v4126_v37 = vpop.eup %3726 }
 0x5fe   :  { %v871_v38 = vsel %vm75_vm0, %v4126_v37, 0.0  ;;  %v4136_v48 = vpop.eup %3728 }
 0x5ff   :  { %872 = vadd.xlane.f32.xlu1 %v871_v38  ;;  %v4140_v39 = vpop.eup %3730 }
 0x605   :  { %1139 = vrot.lane.b32.xlu0 %v4002_v25, %s3840_s21  ;;  %v862_v25 = vsel %vm75_vm0, %v4136_v48, 0.0 }
 0x610   :  { %1187 = vrot.lane.b32.xlu1 %v4013_v32, %s3840_s21  ;;  %v868_v32 = vsel %vm75_vm0, %v4140_v39, 0.0 }
 0x623   :  { %v852_v49 = vpop.xlane.xlu0 %851  ;;  %v855_v50 = vpop.xlane.xlu1 %854 }
 0x624   :  { %3732 = vrcp.f32 %v852_v49  ;;  %863 = vadd.xlane.f32.xlu0 %v862_v25 }
 0x625   :  { %3734 = vrcp.f32 %v855_v50 }
 0x627   :  { %v1092_v62 = vpop.permute.xlu1 %1091 }
 0x628   :  { %869 = vadd.xlane.f32.xlu0 %v868_v32  ;;  %v1097_v17 = vsel %vm903_vm8, %v1092_v62, 0 }
 0x62e   :  { %v3733_v51 = vpop.eup %3732 }
 0x62f   :  { %v3735_v52 = vpop.eup %3734  ;;  %v882_v55 = vmul.f32 %v3733_v51, %v3717_v13 }
 0x630   :  { %v883_v56 = vmul.f32 %v3735_v52, %v3719_v15 }
 0x631   :  { %v890_v57 = vpack.c.bf16 %v882_v55, %v882_v55 }
 0x632   :  { %v891_v58 = vpack.c.bf16 %v883_v56, %v883_v56 }
 0x633   :  { %3373 = vmatmul.mubr.msk.bf16.vlgmr.msra.gmra.mrb[16].mxu0 %vm75_vm0, %v890_v57 }
 0x634   :  { %3379 = vmatmul.mubr.msk.bf16.vlgmr.msra.gmra.mrb[24].mxu1 %vm75_vm0, %v891_v58  ;;  %3383 = vmatpush3.bf16.msra.mxu0 %v1001_v60  ;;  %v3690_v60 = vld [vmem:[%s4602_s5] sm:$0xff]  }
 0x635   :  { %3389 = vmatpush3.bf16.msra.mxu1 %v1049_v61  ;;  %3384 = vmatprep.mubr.msk.bf16.mxu0 %vm3835_vm7, %v3834_v4 }
 0x636   :  { %3390 = vmatprep.mubr.msk.bf16.mxu1 %vm3835_vm7, %v3834_v4  ;;  %3394 = vmatprep.subr.bf16.mxu0 %v3834_v4 }
 0x637   :  { %3400 = vmatprep.subr.bf16.mxu1 %v3834_v4 }
 0x63e   :  { %1235 = vrot.lane.b32.xlu0 %v4011_v31, %s3840_s21 }
 0x67c   :  { %v858_v0 = vpop.xlane.xlu0 %857 }
 0x67d   :  { %3736 = vrcp.f32 %v858_v0  ;;  %v861_v3 = vpop.xlane.xlu1 %860 }
 0x67e   :  { %3738 = vrcp.f32 %v861_v3 }
 0x680   :  { %v1140_v13 = vpop.permute.xlu0 %1139 }
 0x681   :  { %v1145_v31 = vsel %vm903_vm8, %v1140_v13, 0 }
 0x684   :  { %v867_v7 = vpop.xlane.xlu1 %866 }
 0x685   :  { %3740 = vrcp.f32 %v867_v7 }
 0x687   :  { %v3737_v8 = vpop.eup %3736 }
 0x688   :  { %v3739_v9 = vpop.eup %3738  ;;  %v884_v10 = vmul.f32 %v3737_v8, %v4114_v29  ;;  %v3691_v8 = vld [vmem:[%s4602_s5 + $0x8] sm:$0xff]  }
 0x689   :  { %v885_v11 = vmul.f32 %v3739_v9, %v4116_v30 }
 0x68a   :  { %v892_v15 = vpack.c.bf16 %v884_v10, %v884_v10 }
 0x68b   :  { %v893_v16 = vpack.c.bf16 %v885_v11, %v885_v11 }
 0x68c   :  { %3385 = vmatmul.mubr.msk.bf16.vlgmr.msra.gmra.mrb[20].mxu0 %vm75_vm0, %v892_v15  ;;  %v873_v6 = vpop.xlane.xlu1 %872 }
 0x68d   :  { %3391 = vmatmul.mubr.msk.bf16.vlgmr.msra.gmra.mrb[28].mxu1 %vm75_vm0, %v893_v16  ;;  %3395 = vmatpush3.bf16.msra.mxu0 %v1097_v17  ;;  %3742 = vrcp.f32 %v873_v6 }
 0x68e   :  { %3401 = vmatpush3.bf16.msra.mxu1 %v1145_v31  ;;  %3402 = vmatprep.mubr.msk.bf16.mxu1 %vm3835_vm7, %v3834_v4 }
 0x68f   :  { %3412 = vmatprep.subr.bf16.mxu1 %v3834_v4  ;;  %3396 = vmatprep.mubr.msk.bf16.mxu0 %vm3835_vm7, %v3834_v4  ;;  %v3741_v22 = vpop.eup %3740 }
 0x690   :  { %3406 = vmatprep.subr.bf16.mxu0 %v3834_v4  ;;  %v887_v23 = vmul.f32 %v3741_v22, %v4122_v35  ;;  %v1188_v34 = vpop.permute.xlu1 %1187 }
 0x691   :  { %v1193_v35 = vsel %vm903_vm8, %v1188_v34, 0 }
 0x692   :  { %v895_v18 = vpack.c.bf16 %v887_v23, %v887_v23 }
 0x695   :  { %3403 = vmatmul.mubr.msk.bf16.vlgmr.msra.gmra.mrb[32].mxu1 %vm75_vm0, %v895_v18 }
 0x696   :  { %3414 = vmatprep.mubr.msk.bf16.mxu1 %vm3835_vm7, %v3834_v4 }
 0x697   :  { %v3743_v19 = vpop.eup %3742 }
 0x698   :  { %v889_v27 = vmul.f32 %v3743_v19, %v4126_v37 }
 0x69a   :  { %v897_v33 = vpack.c.bf16 %v889_v27, %v889_v27 }
 0x6b1   :  { %v864_v14 = vpop.xlane.xlu0 %863 }
 0x6b2   :  { %3744 = vrcp.f32 %v864_v14 }
 0x6b5   :  { %v870_v20 = vpop.xlane.xlu0 %869 }
 0x6b6   :  { %3746 = vrcp.f32 %v870_v20 }
 0x6b9   :  { %v1236_v28 = vpop.permute.xlu0 %1235 }
 0x6ba   :  { %v1241_v29 = vsel %vm903_vm8, %v1236_v28, 0 }
 0x6bb   :  { %3413 = vmatpush3.bf16.msra.mxu1 %v1241_v29 }
 0x6bc   :  { %v3745_v30 = vpop.eup %3744  ;;  %3426 = vmatprep.subr.bf16.mxu1 %v3834_v4 }
 0x6bd   :  { %v886_v26 = vmul.f32 %v3745_v30, %v4136_v48 }
 0x6be   :  { %3415 = vmatmul.mubr.msk.bf16.vlgmr.msra.gmra.mrb[36].mxu1 %vm75_vm0, %v897_v33 }
 0x6bf   :  { %v894_v21 = vpack.c.bf16 %v886_v26, %v886_v26  ;;  %3430 = vmatprep.mubr.msk.bf16.mxu1 %vm3835_vm7, %v3834_v4 }
 0x6c0   :  { %v3747_v24 = vpop.eup %3746 }
 0x6c1   :  { %3397 = vmatmul.mubr.msk.bf16.vlgmr.msra.gmra.mrb[24].mxu0 %vm75_vm0, %v894_v21  ;;  %v888_v36 = vmul.f32 %v3747_v24, %v4140_v39 }
 0x6c2   :  { %3407 = vmatpush3.bf16.msra.mxu0 %v1193_v35  ;;  %3408 = vmatprep.mubr.msk.bf16.mxu0 %vm3835_vm7, %v3834_v4 }
 0x6c3   :  { %3418 = vmatprep.subr.bf16.mxu0 %v3834_v4  ;;  %v896_v37 = vpack.c.bf16 %v888_v36, %v888_v36  ;;  %v1323_v36 = vrot.slane %v3985_v5, %v3970_v59 }
 0x6c9   :  { %3409 = vmatmul.mubr.msk.bf16.vlgmr.msra.gmra.mrb[28].mxu0 %vm75_vm0, %v896_v37 }
 0x6ca   :  { %3422 = vmatprep.mubr.msk.bf16.mxu0 %vm3835_vm7, %v3834_v4  ;;  %3419 = vmatpush3.bf16.msra.mxu0 %v3690_v60 }
 0x6cb   :  { %3420 = vmatprep.subr.bf16.mxu0 %v3834_v4 }
 0x6ce   :  { %3421 = vmatpush3.bf16.msra.mxu0 %v3691_v8 }
 0x6cf   :  { %3434 = vmatprep.subr.bf16.mxu0 %v3834_v4 }
 0x706   :  { %v941_v38 = vpop.f32.mrb[16].mxu0 }
 0x707   :  { %v989_v40 = vpop.f32.mrb[24].mxu1  ;;  %v3374_v41 = vpop.f32.mrb[17].mxu0 }
 0x708   :  { %v3380_v42 = vpop.f32.mrb[25].mxu1  ;;  %v944_v43 = vpop.f32.mrb[18].mxu0 }
 0x709   :  { %v992_v44 = vpop.f32.mrb[26].mxu1  ;;  %v3375_v45 = vpop.f32.mrb[19].mxu0 }
 0x70a   :  { %v3381_v46 = vpop.f32.mrb[27].mxu1 }
 0x75f   :  { %v1037_v47 = vpop.f32.mrb[20].mxu0 }
 0x760   :  { %v1085_v48 = vpop.f32.mrb[28].mxu1  ;;  %v3386_v49 = vpop.f32.mrb[21].mxu0 }
 0x761   :  { %v3643_v50 = vpack.i.bf16 %v1085_v48, %v1037_v47  ;;  %v3392_v25 = vpop.f32.mrb[29].mxu1  ;;  %v1040_v39 = vpop.f32.mrb[22].mxu0 }
 0x762   :  { %v1088_v32 = vpop.f32.mrb[30].mxu1  ;;  %v3387_v51 = vpop.f32.mrb[23].mxu0 }
 0x763   :  { %3644 = vrot.lane.b32.xlu1 %v3643_v50, %s3842_s1  ;;  %v3393_v52 = vpop.f32.mrb[31].mxu1 }
 0x768   :  { %v1181_v55 = vpop.f32.mrb[32].mxu1 }
 0x769   :  { %v3404_v56 = vpop.f32.mrb[33].mxu1 }
 0x76a   :  { %v1184_v57 = vpop.f32.mrb[34].mxu1  ;;  %v3693_v56 = vld [vmem:[%s4603_s6 + $0x8] sm:$0xff]  }
 0x76b   :  { %v3405_v58 = vpop.f32.mrb[35].mxu1 }
 0x791   :  { %v1277_v61 = vpop.f32.mrb[36].mxu1 }
 0x792   :  { %v3416_v62 = vpop.f32.mrb[37].mxu1 }
 0x793   :  { %v1280_v0 = vpop.f32.mrb[38].mxu1 }
 0x794   :  { %v1133_v3 = vpop.f32.mrb[24].mxu0  ;;  %v3417_v7 = vpop.f32.mrb[39].mxu1 }
 0x795   :  { %v3648_v9 = vpack.i.bf16 %v1181_v55, %v1133_v3  ;;  %v3398_v10 = vpop.f32.mrb[25].mxu0  ;;  %v4225_v3 = vsub.s32 2, %v3960_v53 }
 0x796   :  { %v1136_v11 = vpop.f32.mrb[26].mxu0  ;;  %v4230_v10 = vsub.s32 3, %v3960_v53 }
 0x797   :  { %v3399_v13 = vpop.f32.mrb[27].mxu0  ;;  %3649 = vrot.lane.b32.xlu0 %v3648_v9, %s3843_s28  ;;  %v1411_v8 = vrot.slane %v3985_v5, %v4225_v3 }
 0x79c   :  { %v1229_v15 = vpop.f32.mrb[28].mxu0 }
 0x79d   :  { %v3653_v16 = vpack.i.bf16 %v1277_v61, %v1229_v15  ;;  %v3410_v17 = vpop.f32.mrb[29].mxu0 }
 0x79e   :  { %v1232_v31 = vpop.f32.mrb[30].mxu0 }
 0x79f   :  { %3654 = vrot.lane.b32.xlu1 %v3653_v16, %s3844_s29  ;;  %v3411_v22 = vpop.f32.mrb[31].mxu0  ;;  %v1417_v16 = vrot.slane %v3985_v5, %v4230_v10 }
 0x7d5   :  { %v3645_v23 = vpop.permute.xlu1 %3644 }
 0x7d6   :  { %v3647_v6 = vunpack.i.h.bf16 %v3645_v23  ;;  %v3646_v14 = vunpack.i.l.bf16 %v3645_v23 }
 0x7d8   :  { %v1308_v28 = vsel %vm75_vm0, %v989_v40, %v3647_v6  ;;  %v1307_v29 = vsel %vm75_vm0, %v941_v38, %v3646_v14  ;;  %v3695_v6 = vld [vmem:[%s4604_s7 + $0x8] sm:$0xff]   ;;  %v3696_v14 = vld [vmem:[%s4604_s7 + $0x10] sm:$0xff]  }
 0x809   :  { %v3650_v18 = vpop.permute.xlu0 %3649 }
 0x80a   :  { %v3652_v19 = vunpack.i.h.bf16 %v3650_v18  ;;  %v3651_v20 = vunpack.i.l.bf16 %v3650_v18  ;;  %v3694_v18 = vld [vmem:[%s4604_s7] sm:$0xff]  }
 0x80c   :  { %v1310_v26 = vsel %vm1309_vm9, %v1307_v29, %v3651_v20  ;;  %v1311_v34 = vsel %vm1309_vm9, %v1308_v28, %v3652_v19  ;;  %v3697_v19 = vld [vmem:[%s4604_s7 + $0x18] sm:$0xff]   ;;  %v1427_v20 = vsub.s32 4, %v3960_v53 }
 0x811   :  { %v3655_v27 = vpop.permute.xlu1 %3654 }
 0x812   :  { %v3657_v30 = vunpack.i.h.bf16 %v3655_v27  ;;  %v3656_v33 = vunpack.i.l.bf16 %v3655_v27  ;;  %v1428_v27 = vrot.slane %v3985_v5, %v1427_v20 }
 0x814   :  { %v1313_v21 = vsel %vm1312_vm10, %v1310_v26, %v3656_v33  ;;  %v1314_v24 = vsel %vm1312_vm10, %v1311_v34, %v3657_v30 }
 0x815   :  { %v1315_v35 = vpack.c.bf16 %v1314_v24, %v1313_v21 }
 0x817   :  { %3423 = vmatmul.mubr.msk.bf16.vlgmr.msra.gmra.mrb[32].mxu0 %vm241_vm6, %v1315_v35 }
 0x818   :  { %3442 = vmatprep.mubr.msk.bf16.mxu0 %vm3835_vm7, %v3834_v4  ;;  %3435 = vmatpush3.bf16.msra.mxu0 %v3694_v18 }
 0x819   :  { %3436 = vmatprep.subr.bf16.mxu0 %v3834_v4 }
 0x81c   :  { %3437 = vmatpush3.bf16.msra.mxu0 %v3695_v6 }
 0x81d   :  { %3438 = vmatprep.subr.bf16.mxu0 %v3834_v4 }
 0x820   :  { %3439 = vmatpush3.bf16.msra.mxu0 %v3696_v14 }
 0x821   :  { %3440 = vmatprep.subr.bf16.mxu0 %v3834_v4 }
 0x824   :  { %3441 = vmatpush3.bf16.msra.mxu0 %v3697_v19 }
 0x825   :  { %3460 = vmatprep.subr.bf16.mxu0 %v3834_v4 }
 0x8ea   :  { %v1373_v37 = vpop.f32.mrb[32].mxu0 }
 0x8eb   :  { %v1374_v38 = vadd.f32 %v1373_v37, %v1323_v36  ;;  %v3424_v40 = vpop.f32.mrb[33].mxu0 }
 0x8ec   :  { %v1376_v41 = vpop.f32.mrb[34].mxu0 }
 0x8ed   :  { %v1377_v42 = vadd.f32 %v1376_v41, %v1323_v36  ;;  %v3425_v43 = vpop.f32.mrb[35].mxu0  ;;  %v1380_v44 = vadd.f32 %v1374_v38, %v3973_v1 }
 0x8ef   :  { %v1382_v45 = vsel %vm241_vm6, %v1380_v44, 0.0  ;;  %v1381_v46 = vadd.f32 %v1377_v42, %v3975_v2  ;;  %v3692_v2 = vld [vmem:[%s4603_s6] sm:$0xff]  }
 0x8f0   :  { %1383 = vadd.xlane.f32.xlu0 %v1382_v45  ;;  %3427 = vmatpush3.bf16.msra.mxu1 %v3692_v2 }
 0x8f1   :  { %v1385_v47 = vsel %vm241_vm6, %v1381_v46, 0.0  ;;  %3428 = vmatprep.subr.bf16.mxu1 %v3834_v4 }
 0x8f2   :  { %1386 = vadd.xlane.f32.xlu1 %v1385_v47 }
 0x8f4   :  { %3429 = vmatpush3.bf16.msra.mxu1 %v3693_v56 }
 0x8f5   :  { %3446 = vmatprep.subr.bf16.mxu1 %v3834_v4 }
 0x97d   :  { %v1384_v48 = vpop.xlane.xlu0 %1383 }
 0x97e   :  { %v1388_v49 = vmul.f32 0.03125, %v1384_v48 }
 0x97f   :  { %v1387_v50 = vpop.xlane.xlu1 %1386 }
 0x980   :  { %v1390_v25 = vsub.f32 %v1380_v44, %v1388_v49  ;;  %v1389_v39 = vmul.f32 0.03125, %v1387_v50 }
 0x982   :  { %v1391_v32 = vsub.f32 %v1381_v46, %v1389_v39  ;;  %v1392_v51 = vmul.f32 %v1390_v25, %v1390_v25 }
 0x984   :  { %v1394_v52 = vsel %vm241_vm6, %v1392_v51, 0.0  ;;  %v1393_v55 = vmul.f32 %v1391_v32, %v1391_v32 }
 0x985   :  { %1395 = vadd.xlane.f32.xlu0 %v1394_v52 }
 0x986   :  { %v1397_v1 = vsel %vm241_vm6, %v1393_v55, 0.0 }
 0x989   :  { %1398 = vadd.xlane.f32.xlu0 %v1397_v1 }
 0xa12   :  { %v1396_v57 = vpop.xlane.xlu0 %1395 }
 0xa13   :  { %v1400_v58 = vmul.f32 0.03125, %v1396_v57 }
 0xa15   :  { %v1402_v60 = vadd.f32 1e-12, %v1400_v58 }
 0xa16   :  { %v1399_v61 = vpop.xlane.xlu0 %1398 }
 0xa17   :  { %3748 = vrsqrt.f32 %v1402_v60  ;;  %v1401_v62 = vmul.f32 0.03125, %v1399_v61 }
 0xa19   :  { %v1403_v0 = vadd.f32 1e-12, %v1401_v62 }
 0xa1b   :  { %3750 = vrsqrt.f32 %v1403_v0 }
 0xa21   :  { %v3749_v7 = vpop.eup %3748 }
 0xa22   :  { %v1406_v9 = vmul.f32 %v3749_v7, %v1390_v25 }
 0xa24   :  { %v1412_v13 = vmul.f32 %v1411_v8, %v1406_v9 }
 0xa25   :  { %v3751_v11 = vpop.eup %3750 }
 0xa26   :  { %v1407_v15 = vmul.f32 %v3751_v11, %v1391_v32  ;;  %v1418_v31 = vadd.f32 %v1417_v16, %v1412_v13  ;;  %v1514_v32 = vsub.s32 5, %v3960_v53 }
 0xa28   :  { %v1413_v17 = vmul.f32 %v1411_v8, %v1407_v15  ;;  %v1515_v51 = vrot.slane %v3985_v5, %v1514_v32 }
 0xa2a   :  { %v1419_v22 = vadd.f32 %v1417_v16, %v1413_v17 }
 0xa2c   :  { %v1420_v23 = vpack.c.bf16 %v1419_v22, %v1418_v31 }
 0xa2e   :  { %3431 = vmatmul.mubr.msk.bf16.vlgmr.msra.gmra.mrb[40].mxu1 %vm241_vm6, %v1420_v23 }
 0xa2f   :  { %3450 = vmatprep.mubr.msk.bf16.mxu1 %vm3835_vm7, %v3834_v4 }
 0xb01   :  { %v1478_v28 = vpop.f32.mrb[40].mxu1 }
 0xb02   :  { %v1479_v29 = vadd.f32 %v1478_v28, %v1428_v27  ;;  %v3432_v30 = vpop.f32.mrb[41].mxu1  ;;  %v1614_v28 = vsub.s32 6, %v3960_v53 }
 0xb03   :  { %v1481_v33 = vpop.f32.mrb[42].mxu1 }
 0xb04   :  { %v1487_v26 = vmul.f32 0.044715, %v1479_v29  ;;  %v1482_v34 = vadd.f32 %v1481_v33, %v1428_v27  ;;  %v3433_v21 = vpop.f32.mrb[43].mxu1  ;;  %v1485_v47 = vmul.f32 0.5, %v1479_v29  ;;  %v1620_v33 = vsub.s32 7, %v3960_v53 }
 0xb05   :  { %v3710_v53 = vld [vmem:[%s4605_s8] ss:$8 sps:$4 sm:$0xff]  }
 0xb06   :  { %v1489_v24 = vmul.f32 %v1487_v26, %v1479_v29  ;;  %v1488_v35 = vmul.f32 0.044715, %v1482_v34  ;;  %v1486_v48 = vmul.f32 0.5, %v1482_v34 }
 0xb08   :  { %v1491_v36 = vmul.f32 %v1489_v24, %v1479_v29  ;;  %v1490_v37 = vmul.f32 %v1488_v35, %v1482_v34 }
 0xb0a   :  { %v1493_v38 = vadd.f32 %v1491_v36, %v1479_v29  ;;  %v1492_v40 = vmul.f32 %v1490_v37, %v1482_v34  ;;  %v3806_v29 = vld [vmem:[%s4600_s3] sm:$0xff] }
 0xb0b   :  { %v1615_v30 = vrot.slane %v3806_v29, %v1614_v28  ;;  %v1621_v36 = vrot.slane %v3806_v29, %v1620_v33 }
 0xb0c   :  { %v1495_v41 = vmul.f32 0.7978846, %v1493_v38  ;;  %v1494_v42 = vadd.f32 %v1492_v40, %v1482_v34 }
 0xb0e   :  { %3752 = vtanh.f32 %v1495_v41  ;;  %v1496_v43 = vmul.f32 0.7978846, %v1494_v42  ;;  %v4297_v42 = vld [vmem:[%s4600_s3 + $0x8] sm:$0xff] }
 0xb10   :  { %3754 = vtanh.f32 %v1496_v43  ;;  %v1633_v43 = vrot.slane %v4297_v42, %v3963_v54 }
 0xb18   :  { %v3753_v44 = vpop.eup %3752 }
 0xb19   :  { %v1499_v45 = vadd.f32 1.0, %v3753_v44 }
 0xb1a   :  { %v3755_v46 = vpop.eup %3754 }
 0xb1b   :  { %v1500_v49 = vadd.f32 1.0, %v3755_v46  ;;  %v1501_v50 = vmul.f32 %v1499_v45, %v1485_v47 }
 0xb1d   :  { %v1502_v25 = vmul.f32 %v1500_v49, %v1486_v48 }
 0xb1f   :  { %v1503_v39 = vpack.c.bf16 %v1502_v25, %v1501_v50 }
 0xb21   :  { %3443 = vmatmul.mubr.msk.bf16.vlgmr.msra.gmra.mrb[36].mxu0 %vm157_vm4, %v1503_v39 }
 0xb22   :  { %3462 = vmatprep.mubr.msk.bf16.mxu0 %vm3835_vm7, %v3834_v4 }
 0xbf4   :  { %v1577_v52 = vpop.f32.mrb[36].mxu0 }
 0xbf5   :  { %v1578_v55 = vadd.f32 %v1577_v52, %v1515_v51  ;;  %v3444_v1 = vpop.f32.mrb[37].mxu0 }
 0xbf6   :  { %v1580_v2 = vpop.f32.mrb[38].mxu0 }
 0xbf7   :  { %v1581_v56 = vadd.f32 %v1580_v2, %v1515_v51  ;;  %v3445_v57 = vpop.f32.mrb[39].mxu0  ;;  %v1584_v58 = vadd.f32 %v1578_v55, %v1418_v31  ;;  %v3698_v31 = vld [vmem:[%s4601_s4 + $0x10] sm:$0xff]  }
 0xbf8   :  { %3447 = vmatpush3.bf16.msra.mxu1 %v3698_v31 }
 0xbf9   :  { %v1586_v60 = vsel %vm241_vm6, %v1584_v58, 0.0  ;;  %v1585_v61 = vadd.f32 %v1581_v56, %v1419_v22  ;;  %v3699_v22 = vld [vmem:[%s4601_s4 + $0x18] sm:$0xff]   ;;  %3448 = vmatprep.subr.bf16.mxu1 %v3834_v4 }
 0xbfa   :  { %1587 = vadd.xlane.f32.xlu1 %v1586_v60 }
 0xbfb   :  { %v1589_v62 = vsel %vm241_vm6, %v1585_v61, 0.0 }
 0xbfc   :  { %1590 = vadd.xlane.f32.xlu0 %v1589_v62  ;;  %3449 = vmatpush3.bf16.msra.mxu1 %v3699_v22 }
 0xbfd   :  { %3454 = vmatprep.subr.bf16.mxu1 %v3834_v4 }
 0xc87   :  { %v1588_v0 = vpop.xlane.xlu1 %1587 }
 0xc88   :  { %v1592_v7 = vmul.f32 0.03125, %v1588_v0 }
 0xc89   :  { %v1591_v8 = vpop.xlane.xlu0 %1590 }
 0xc8a   :  { %v1594_v9 = vsub.f32 %v1584_v58, %v1592_v7  ;;  %v1593_v11 = vmul.f32 0.03125, %v1591_v8 }
 0xc8c   :  { %v1595_v5 = vsub.f32 %v1585_v61, %v1593_v11  ;;  %v1596_v13 = vmul.f32 %v1594_v9, %v1594_v9 }
 0xc8e   :  { %v1598_v15 = vsel %vm241_vm6, %v1596_v13, 0.0  ;;  %v1597_v16 = vmul.f32 %v1595_v5, %v1595_v5 }
 0xc8f   :  { %1599 = vadd.xlane.f32.xlu1 %v1598_v15 }
 0xc90   :  { %v1601_v17 = vsel %vm241_vm6, %v1597_v16, 0.0 }
 0xc91   :  { %1602 = vadd.xlane.f32.xlu0 %v1601_v17 }
 0xd1c   :  { %v1600_v23 = vpop.xlane.xlu1 %1599 }
 0xd1d   :  { %v1604_v18 = vmul.f32 0.03125, %v1600_v23 }
 0xd1e   :  { %v1603_v6 = vpop.xlane.xlu0 %1602 }
 0xd1f   :  { %v1606_v14 = vadd.f32 1e-12, %v1604_v18  ;;  %v1605_v19 = vmul.f32 0.03125, %v1603_v6 }
 0xd21   :  { %3756 = vrsqrt.f32 %v1606_v14  ;;  %v1607_v27 = vadd.f32 1e-12, %v1605_v19 }
 0xd23   :  { %3758 = vrsqrt.f32 %v1607_v27 }
 0xd2b   :  { %v3757_v26 = vpop.eup %3756 }
 0xd2c   :  { %v1610_v34 = vmul.f32 %v3757_v26, %v1594_v9 }
 0xd2d   :  { %v3759_v21 = vpop.eup %3758 }
 0xd2e   :  { %v1616_v24 = vmul.f32 %v1615_v30, %v1610_v34  ;;  %v1611_v35 = vmul.f32 %v3759_v21, %v1595_v5 }
 0xd30   :  { %v1617_v37 = vmul.f32 %v1615_v30, %v1611_v35  ;;  %v4285_v38 = vadd.f32 %v1621_v36, %v1616_v24 }
 0xd32   :  { %v4287_v40 = vadd.f32 %v1621_v36, %v1617_v37 }
 0xd34   :  { %v1624_v41 = vpack.c.bf16 %v4287_v40, %v4285_v38 }
 0xd36   :  { %3451 = vmatmul.mubr.msk.bf16.vlgmr.msra.gmra.mrb[44].mxu1 %vm241_vm6, %v1624_v41 }
 0xd37   :  { %3456 = vmatprep.mubr.msk.bf16.mxu1 %vm3835_vm7, %v3834_v4 }
 0xe09   :  { %v1683_v44 = vpop.f32.mrb[44].mxu1 }
 0xe0a   :  { %v3452_v45 = vpop.f32.mrb[45].mxu1  ;;  %v1684_v47 = vadd.f32 %v1683_v44, %v1633_v43 }
 0xe0b   :  { %v1686_v46 = vpop.f32.mrb[46].mxu1 }
 0xe0c   :  { %v1687_v48 = vadd.f32 %v1686_v46, %v1633_v43  ;;  %v3453_v49 = vpop.f32.mrb[47].mxu1  ;;  %v1710_v39 = vpack.c.bf16 %v1684_v47, %v1684_v47 }
 0xe0e   :  { %v3663_v50 = vpack.i.bf16 %v1687_v48, %v1684_v47  ;;  %v1711_v25 = vpack.c.bf16 %v1687_v48, %v1687_v48 }
 0xe10   :  { %3664 = vrot.lane.b32.xlu0 %v3663_v50, %s3836_s18  ;;  %3659 = vrot.lane.b32.xlu1 %v3663_v50, %s3837_s0 }
 0xe14   :  { %3669 = vrot.lane.b32.xlu1 %v3663_v50, %s3839_s20  ;;  %1768 = vrot.lane.b32.xlu0 %v1711_v25, %s3838_s19 }
 0xe18   :  { %1719 = vrot.lane.b32.xlu1 %v1710_v39, %s3838_s19 }
 0xe82   :  { %v3665_v54 = vpop.permute.xlu0 %3664  ;;  %v3660_v51 = vpop.permute.xlu1 %3659 }
 0xe83   :  { %v3662_v52 = vunpack.i.h.bf16 %v3660_v51  ;;  %v3661_v55 = vunpack.i.l.bf16 %v3660_v51  ;;  %v3667_v1 = vunpack.i.h.bf16 %v3665_v54  ;;  %v3666_v2 = vunpack.i.l.bf16 %v3665_v54 }
 0xe85   :  { %v4306_v56 = vpack.c.bf16 %v3662_v52, %v3662_v52  ;;  %v4308_v57 = vpack.c.bf16 %v3661_v55, %v3661_v55  ;;  %v4315_v62 = vpack.c.bf16 %v3667_v1, %v3667_v1  ;;  %v4317_v0 = vpack.c.bf16 %v3666_v2, %v3666_v2 }
 0xe86   :  { %v3670_v58 = vpop.permute.xlu1 %3669  ;;  %v1769_v60 = vpop.permute.xlu0 %1768 }
 0xe87   :  { %v1774_v61 = vsel %vm75_vm0, %v1769_v60, 0  ;;  %1817 = vrot.lane.b32.xlu1 %v4308_v57, %s3838_s19  ;;  %1866 = vrot.lane.b32.xlu0 %v4306_v56, %s3838_s19  ;;  %v3672_v7 = vunpack.i.h.bf16 %v3670_v58  ;;  %v3671_v8 = vunpack.i.l.bf16 %v3670_v58 }
 0xe88   :  { %3461 = vmatpush3.bf16.xpose.msra.mxu0 %v1774_v61 }
 0xe89   :  { %3472 = vmatprep.subr.bf16.mxu0 %v3834_v4  ;;  %v4325_v5 = vpack.c.bf16 %v3672_v7, %v3672_v7  ;;  %v4327_v13 = vpack.c.bf16 %v3671_v8, %v3671_v8 }
 0xe8a   :  { %v1720_v9 = vpop.permute.xlu1 %1719 }
 0xe8b   :  { %v1725_v11 = vsel %vm75_vm0, %v1720_v9, 0  ;;  %1915 = vrot.lane.b32.xlu1 %v4317_v0, %s3838_s19  ;;  %1964 = vrot.lane.b32.xlu0 %v4315_v62, %s3838_s19 }
 0xe8c   :  { %3455 = vmatpush3.bf16.xpose.msra.mxu1 %v1725_v11 }
 0xe8d   :  { %3466 = vmatprep.subr.bf16.mxu1 %v3834_v4 }
 0xe8f   :  { %2013 = vrot.lane.b32.xlu1 %v4327_v13, %s3838_s19  ;;  %2062 = vrot.lane.b32.xlu0 %v4325_v5, %s3838_s19 }
 0xe90   :  { %3463 = vmatmul.mubr.msk.bf16.vlgmr.msra.gmra.mrb[40].mxu0 %vm75_vm0, %v1711_v25 }
 0xe91   :  { %3474 = vmatprep.mubr.msk.bf16.mxu0 %vm3835_vm7, %v3834_v4 }
 0xe93   :  { %3457 = vmatmul.mubr.msk.bf16.vlgmr.msra.gmra.mrb[48].mxu1 %vm75_vm0, %v1710_v39  ;;  %2254 = vrot.lane.b32.xlu1 %v1711_v25, %s3840_s21 }
 0xe94   :  { %2206 = vrot.lane.b32.xlu0 %v1710_v39, %s3840_s21  ;;  %3468 = vmatprep.mubr.msk.bf16.mxu1 %vm3835_vm7, %v3834_v4 }
 0xef9   :  { %v1818_v15 = vpop.permute.xlu1 %1817  ;;  %v1867_v16 = vpop.permute.xlu0 %1866 }
 0xefa   :  { %v1823_v17 = vsel %vm75_vm0, %v1818_v15, 0  ;;  %v1872_v31 = vsel %vm75_vm0, %v1867_v16, 0 }
 0xefb   :  { %3467 = vmatpush3.bf16.xpose.msra.mxu1 %v1823_v17  ;;  %3473 = vmatpush3.bf16.xpose.msra.mxu0 %v1872_v31 }
 0xefc   :  { %3478 = vmatprep.subr.bf16.mxu1 %v3834_v4  ;;  %3484 = vmatprep.subr.bf16.mxu0 %v3834_v4 }
 0xefd   :  { %v1916_v22 = vpop.permute.xlu1 %1915  ;;  %v1965_v23 = vpop.permute.xlu0 %1964 }
 0xefe   :  { %v1921_v18 = vsel %vm75_vm0, %v1916_v22, 0  ;;  %v1970_v6 = vsel %vm75_vm0, %v1965_v23, 0 }
 0xf01   :  { %v2014_v14 = vpop.permute.xlu1 %2013  ;;  %v2063_v19 = vpop.permute.xlu0 %2062 }
 0xf02   :  { %3469 = vmatmul.mubr.msk.bf16.vlgmr.msra.gmra.mrb[52].mxu1 %vm75_vm0, %v4308_v57  ;;  %3475 = vmatmul.mubr.msk.bf16.vlgmr.msra.gmra.mrb[44].mxu0 %vm75_vm0, %v4306_v56  ;;  %v2019_v27 = vsel %vm75_vm0, %v2014_v14, 0  ;;  %v2068_v29 = vsel %vm75_vm0, %v2063_v19, 0 }
 0xf03   :  { %3479 = vmatpush3.bf16.xpose.msra.mxu1 %v1921_v18  ;;  %3485 = vmatpush3.bf16.xpose.msra.mxu0 %v1970_v6 }
 0xf04   :  { %3480 = vmatprep.mubr.msk.bf16.mxu1 %vm3835_vm7, %v3834_v4  ;;  %3486 = vmatprep.mubr.msk.bf16.mxu0 %vm3835_vm7, %v3834_v4 }
 0xf05   :  { %3490 = vmatprep.subr.bf16.mxu1 %v3834_v4  ;;  %3496 = vmatprep.subr.bf16.mxu0 %v3834_v4  ;;  %v2255_v30 = vpop.permute.xlu1 %2254 }
 0xf06   :  { %v2207_v26 = vpop.permute.xlu0 %2206  ;;  %v2260_v34 = vsel %vm903_vm8, %v2255_v30, 0 }
 0xf07   :  { %v2212_v21 = vsel %vm903_vm8, %v2207_v26, 0 }
 0xf0a   :  { %3481 = vmatmul.mubr.msk.bf16.vlgmr.msra.gmra.mrb[56].mxu1 %vm75_vm0, %v4317_v0  ;;  %3487 = vmatmul.mubr.msk.bf16.vlgmr.msra.gmra.mrb[48].mxu0 %vm75_vm0, %v4315_v62 }
 0xf0b   :  { %3491 = vmatpush3.bf16.xpose.msra.mxu1 %v2019_v27  ;;  %3497 = vmatpush3.bf16.xpose.msra.mxu0 %v2068_v29 }
 0xf0c   :  { %3492 = vmatprep.mubr.msk.bf16.mxu1 %vm3835_vm7, %v3834_v4  ;;  %3498 = vmatprep.mubr.msk.bf16.mxu0 %vm3835_vm7, %v3834_v4 }
 0xf0d   :  { %3502 = vmatprep.subr.bf16.mxu1 %v3834_v4  ;;  %3508 = vmatprep.subr.bf16.mxu0 %v3834_v4 }
 0xf12   :  { %3493 = vmatmul.mubr.msk.bf16.vlgmr.msra.gmra.mrb[60].mxu1 %vm75_vm0, %v4327_v13  ;;  %3499 = vmatmul.mubr.msk.bf16.vlgmr.msra.gmra.mrb[52].mxu0 %vm75_vm0, %v4325_v5 }
 0xf13   :  { %3503 = vmatpush3.bf16.msra.mxu1 %v2212_v21  ;;  %3509 = vmatpush3.bf16.msra.mxu0 %v2260_v34 }
 0xf14   :  { %3504 = vmatprep.mubr.msk.bf16.mxu1 %vm3835_vm7, %v3834_v4  ;;  %3510 = vmatprep.mubr.msk.bf16.mxu0 %vm3835_vm7, %v3834_v4 }
 0xf15   :  { %3514 = vmatprep.subr.bf16.mxu1 %v3834_v4  ;;  %3520 = vmatprep.subr.bf16.mxu0 %v3834_v4 }
 0xf63   :  { %v1810_v24 = vpop.f32.mrb[40].mxu0 }
 0xf64   :  { %v1811_v35 = vadd.f32 %v1810_v24, %v4083_v12  ;;  %v3464_v36 = vpop.f32.mrb[41].mxu0 }
 0xf65   :  { %v1813_v37 = vpop.f32.mrb[42].mxu0 }
 0xf66   :  { %v3465_v41 = vpop.f32.mrb[43].mxu0  ;;  %v1761_v43 = vpop.f32.mrb[48].mxu1  ;;  %v2113_v44 = vsel %vm75_vm0, %v1811_v35, -inf }
 0xf67   :  { %v1762_v45 = vadd.f32 %v1761_v43, %v4075_v63  ;;  %2114 = vmax.xlane.f32.xlu0 %v2113_v44  ;;  %v3458_v46 = vpop.f32.mrb[49].mxu1 }
 0xf68   :  { %v1764_v47 = vpop.f32.mrb[50].mxu1 }
 0xf69   :  { %v3459_v48 = vpop.f32.mrb[51].mxu1  ;;  %v2110_v49 = vsel %vm75_vm0, %v1762_v45, -inf }
 0xf6a   :  { %2111 = vmax.xlane.f32.xlu1 %v2110_v49 }
 0xfd5   :  { %v1859_v50 = vpop.f32.mrb[52].mxu1  ;;  %v1908_v25 = vpop.f32.mrb[44].mxu0 }
 0xfd6   :  { %v1860_v39 = vadd.f32 %v1859_v50, %v4075_v63  ;;  %v1909_v54 = vadd.f32 %v1908_v25, %v4083_v12  ;;  %v3470_v51 = vpop.f32.mrb[53].mxu1  ;;  %v3476_v52 = vpop.f32.mrb[45].mxu0 }
 0xfd7   :  { %v1862_v55 = vpop.f32.mrb[54].mxu1  ;;  %v1911_v1 = vpop.f32.mrb[46].mxu0 }
 0xfd8   :  { %v3471_v2 = vpop.f32.mrb[55].mxu1  ;;  %v3477_v58 = vpop.f32.mrb[47].mxu0  ;;  %v2116_v60 = vsel %vm75_vm0, %v1860_v39, -inf  ;;  %v2119_v61 = vsel %vm75_vm0, %v1909_v54, -inf }
 0xfd9   :  { %2117 = vmax.xlane.f32.xlu0 %v2116_v60  ;;  %2120 = vmax.xlane.f32.xlu1 %v2119_v61 }
 0xfdd   :  { %v1957_v7 = vpop.f32.mrb[56].mxu1  ;;  %v2006_v8 = vpop.f32.mrb[48].mxu0 }
 0xfde   :  { %v4391_v9 = vadd.f32 %v1957_v7, %v4075_v63  ;;  %v2007_v11 = vadd.f32 %v2006_v8, %v4083_v12  ;;  %v3482_v15 = vpop.f32.mrb[57].mxu1  ;;  %v3488_v16 = vpop.f32.mrb[49].mxu0 }
 0xfdf   :  { %v1960_v17 = vpop.f32.mrb[58].mxu1  ;;  %v2009_v31 = vpop.f32.mrb[50].mxu0 }
 0xfe0   :  { %v3483_v22 = vpop.f32.mrb[59].mxu1  ;;  %v3489_v23 = vpop.f32.mrb[51].mxu0  ;;  %v2122_v18 = vsel %vm75_vm0, %v4391_v9, -inf  ;;  %v2125_v6 = vsel %vm75_vm0, %v2007_v11, -inf }
 0xfe1   :  { %2123 = vmax.xlane.f32.xlu0 %v2122_v18  ;;  %2126 = vmax.xlane.f32.xlu1 %v2125_v6 }
 0xfe5   :  { %v2055_v14 = vpop.f32.mrb[60].mxu1  ;;  %v2104_v19 = vpop.f32.mrb[52].mxu0 }
 0xfe6   :  { %v4398_v27 = vadd.f32 %v2055_v14, %v4075_v63  ;;  %v2105_v29 = vadd.f32 %v2104_v19, %v4083_v12  ;;  %v3494_v30 = vpop.f32.mrb[61].mxu1  ;;  %v3500_v26 = vpop.f32.mrb[53].mxu0 }
 0xfe7   :  { %v2058_v34 = vpop.f32.mrb[62].mxu1  ;;  %v2107_v21 = vpop.f32.mrb[54].mxu0 }
 0xfe8   :  { %v3495_v24 = vpop.f32.mrb[63].mxu1  ;;  %v3501_v36 = vpop.f32.mrb[55].mxu0  ;;  %v2128_v37 = vsel %vm75_vm0, %v4398_v27, -inf  ;;  %v2131_v41 = vsel %vm75_vm0, %v2105_v29, -inf }
 0xfe9   :  { %2129 = vmax.xlane.f32.xlu0 %v2128_v37  ;;  %2132 = vmax.xlane.f32.xlu1 %v2131_v41 }
 0xff4   :  { %v2115_v63 = vpop.xlane.xlu0 %2114 }
 0xff5   :  { %v2135_v43 = vsub.f32 %v1811_v35, %v2115_v63 }
 0xff7   :  { %v2112_v12 = vpop.xlane.xlu1 %2111  ;;  %v2144_v46 = vmul.f32 1.442695, %v2135_v43 }
 0xff8   :  { %v2134_v44 = vsub.f32 %v1762_v45, %v2112_v12 }
 0xff9   :  { %3760 = vpow2.f32 %v2144_v46 }
 0xffa   :  { %2302 = vrot.lane.b32.xlu1 %v4308_v57, %s3840_s21  ;;  %v2142_v47 = vmul.f32 1.442695, %v2134_v44 }
 0xffc   :  { %3762 = vpow2.f32 %v2142_v47 }
 0xfff   :  { %2350 = vrot.lane.b32.xlu0 %v4306_v56, %s3840_s21 }
0x1003   :  { %v3761_v48 = vpop.eup %3760 }
0x1004   :  { %v2161_v25 = vsel %vm75_vm0, %v3761_v48, 0.0 }
0x1006   :  { %v3763_v49 = vpop.eup %3762 }
0x1007   :  { %v2158_v50 = vsel %vm75_vm0, %v3763_v49, 0.0 }
0x101e   :  { %2159 = vadd.xlane.f32.xlu0 %v2158_v50  ;;  %2162 = vadd.xlane.f32.xlu1 %v2161_v25 }
0x102f   :  { %2398 = vrot.lane.b32.xlu1 %v4317_v0, %s3840_s21 }
0x1066   :  { %v2118_v56 = vpop.xlane.xlu0 %2117  ;;  %v2121_v57 = vpop.xlane.xlu1 %2120 }
0x1067   :  { %v2136_v51 = vsub.f32 %v1860_v39, %v2118_v56  ;;  %v2137_v35 = vsub.f32 %v1909_v54, %v2121_v57 }
0x1069   :  { %v2146_v45 = vmul.f32 1.442695, %v2136_v51  ;;  %v2148_v52 = vmul.f32 1.442695, %v2137_v35 }
0x106b   :  { %3764 = vpow2.f32 %v2146_v45 }
0x106c   :  { %3766 = vpow2.f32 %v2148_v52 }
0x106e   :  { %v2127_v55 = vpop.xlane.xlu1 %2126  ;;  %v2124_v17 = vpop.xlane.xlu0 %2123 }
0x106f   :  { %v2139_v1 = vsub.f32 %v2007_v11, %v2127_v55  ;;  %v2138_v31 = vsub.f32 %v4391_v9, %v2124_v17 }
0x1071   :  { %v2152_v2 = vmul.f32 1.442695, %v2139_v1  ;;  %v2150_v23 = vmul.f32 1.442695, %v2138_v31 }
0x1073   :  { %3768 = vpow2.f32 %v2152_v2 }
0x1075   :  { %v4412_v58 = vpop.eup %3764 }
0x1076   :  { %v4414_v60 = vpop.eup %3766  ;;  %v2133_v61 = vpop.xlane.xlu1 %2132  ;;  %v2164_v0 = vsel %vm75_vm0, %v4412_v58, 0.0 }
0x1077   :  { %v2141_v7 = vsub.f32 %v2105_v29, %v2133_v61  ;;  %2165 = vadd.xlane.f32.xlu0 %v2164_v0  ;;  %v2167_v39 = vsel %vm75_vm0, %v4414_v60, 0.0  ;;  %v2130_v22 = vpop.xlane.xlu0 %2129 }
0x1078   :  { %2168 = vadd.xlane.f32.xlu1 %v2167_v39  ;;  %v2140_v18 = vsub.f32 %v4398_v27, %v2130_v22 }
0x1079   :  { %v2156_v54 = vmul.f32 1.442695, %v2141_v7 }
0x107a   :  { %v2154_v6 = vmul.f32 1.442695, %v2140_v18  ;;  %v2303_v19 = vpop.permute.xlu1 %2302 }
0x107b   :  { %3770 = vpow2.f32 %v2156_v54  ;;  %v2351_v14 = vpop.permute.xlu0 %2350  ;;  %v2308_v41 = vsel %vm903_vm8, %v2303_v19, 0 }
0x107c   :  { %3772 = vpow2.f32 %v2150_v23  ;;  %v2356_v63 = vsel %vm903_vm8, %v2351_v14, 0 }
0x107d   :  { %v4420_v8 = vpop.eup %3768  ;;  %3774 = vpow2.f32 %v2154_v6 }
0x107e   :  { %v2173_v11 = vsel %vm75_vm0, %v4420_v8, 0.0 }
0x107f   :  { %2174 = vadd.xlane.f32.xlu1 %v2173_v11 }
0x1085   :  { %v4424_v15 = vpop.eup %3770 }
0x1086   :  { %v2179_v16 = vsel %vm75_vm0, %v4424_v15, 0.0  ;;  %v4434_v29 = vpop.eup %3772 }
0x1087   :  { %2180 = vadd.xlane.f32.xlu1 %v2179_v16  ;;  %v4438_v9 = vpop.eup %3774 }
0x108d   :  { %2446 = vrot.lane.b32.xlu0 %v4315_v62, %s3840_s21  ;;  %v2170_v62 = vsel %vm75_vm0, %v4434_v29, 0.0 }
0x1098   :  { %2494 = vrot.lane.b32.xlu1 %v4327_v13, %s3840_s21  ;;  %v2176_v13 = vsel %vm75_vm0, %v4438_v9, 0.0 }
0x10ab   :  { %v2160_v30 = vpop.xlane.xlu0 %2159  ;;  %v2163_v26 = vpop.xlane.xlu1 %2162 }
0x10ac   :  { %3776 = vrcp.f32 %v2160_v30  ;;  %2171 = vadd.xlane.f32.xlu0 %v2170_v62 }
0x10ad   :  { %3778 = vrcp.f32 %v2163_v26 }
0x10af   :  { %v2399_v12 = vpop.permute.xlu1 %2398 }
0x10b0   :  { %2177 = vadd.xlane.f32.xlu0 %v2176_v13  ;;  %v2404_v51 = vsel %vm903_vm8, %v2399_v12, 0 }
0x10b6   :  { %v3777_v27 = vpop.eup %3776 }
0x10b7   :  { %v3779_v34 = vpop.eup %3778  ;;  %v2190_v21 = vmul.f32 %v3777_v27, %v3763_v49 }
0x10b8   :  { %v2191_v24 = vmul.f32 %v3779_v34, %v3761_v48 }
0x10b9   :  { %v2198_v36 = vpack.c.bf16 %v2190_v21, %v2190_v21 }
0x10ba   :  { %v2199_v37 = vpack.c.bf16 %v2191_v24, %v2191_v24 }
0x10bb   :  { %3505 = vmatmul.mubr.msk.bf16.vlgmr.msra.gmra.mrb[64].mxu1 %vm75_vm0, %v2198_v36 }
0x10bc   :  { %3511 = vmatmul.mubr.msk.bf16.vlgmr.msra.gmra.mrb[56].mxu0 %vm75_vm0, %v2199_v37  ;;  %3515 = vmatpush3.bf16.msra.mxu1 %v2308_v41 }
0x10bd   :  { %3521 = vmatpush3.bf16.msra.mxu0 %v2356_v63  ;;  %3516 = vmatprep.mubr.msk.bf16.mxu1 %vm3835_vm7, %v3834_v4 }
0x10be   :  { %3522 = vmatprep.mubr.msk.bf16.mxu0 %vm3835_vm7, %v3834_v4  ;;  %3526 = vmatprep.subr.bf16.mxu1 %v3834_v4 }
0x10bf   :  { %3532 = vmatprep.subr.bf16.mxu0 %v3834_v4 }
0x10c6   :  { %2542 = vrot.lane.b32.xlu0 %v4325_v5, %s3840_s21 }
0x1104   :  { %v2166_v43 = vpop.xlane.xlu0 %2165 }
0x1105   :  { %3780 = vrcp.f32 %v2166_v43  ;;  %v2169_v44 = vpop.xlane.xlu1 %2168  ;;  %v3700_v43 = vld [vmem:[%s4602_s5 + $0x10] sm:$0xff]  }
0x1106   :  { %3782 = vrcp.f32 %v2169_v44 }
0x1108   :  { %v2447_v25 = vpop.permute.xlu0 %2446 }
0x1109   :  { %v2452_v5 = vsel %vm903_vm8, %v2447_v25, 0 }
0x110c   :  { %v2175_v46 = vpop.xlane.xlu1 %2174 }
0x110d   :  { %3784 = vrcp.f32 %v2175_v46 }
0x110f   :  { %v3781_v47 = vpop.eup %3780 }
0x1110   :  { %v3783_v48 = vpop.eup %3782  ;;  %v2192_v49 = vmul.f32 %v3781_v47, %v4412_v58 }
0x1111   :  { %v2193_v50 = vmul.f32 %v3783_v48, %v4414_v60 }
0x1112   :  { %v2200_v56 = vpack.c.bf16 %v2192_v49, %v2192_v49 }
0x1113   :  { %v2201_v57 = vpack.c.bf16 %v2193_v50, %v2193_v50  ;;  %v3701_v50 = vld [vmem:[%s4602_s5 + $0x18] sm:$0xff]  }
0x1114   :  { %3517 = vmatmul.mubr.msk.bf16.vlgmr.msra.gmra.mrb[68].mxu1 %vm75_vm0, %v2200_v56  ;;  %v2181_v55 = vpop.xlane.xlu1 %2180 }
0x1115   :  { %3523 = vmatmul.mubr.msk.bf16.vlgmr.msra.gmra.mrb[60].mxu0 %vm75_vm0, %v2201_v57  ;;  %3527 = vmatpush3.bf16.msra.mxu1 %v2404_v51  ;;  %3786 = vrcp.f32 %v2181_v55 }
0x1116   :  { %3533 = vmatpush3.bf16.msra.mxu0 %v2452_v5  ;;  %3534 = vmatprep.mubr.msk.bf16.mxu0 %vm3835_vm7, %v3834_v4 }
0x1117   :  { %3544 = vmatprep.subr.bf16.mxu0 %v3834_v4  ;;  %3528 = vmatprep.mubr.msk.bf16.mxu1 %vm3835_vm7, %v3834_v4  ;;  %v3785_v35 = vpop.eup %3784 }
0x1118   :  { %3538 = vmatprep.subr.bf16.mxu1 %v3834_v4  ;;  %v2195_v45 = vmul.f32 %v3785_v35, %v4420_v8  ;;  %v2495_v8 = vpop.permute.xlu1 %2494 }
0x111a   :  { %v2203_v52 = vpack.c.bf16 %v2195_v45, %v2195_v45 }
0x111d   :  { %3535 = vmatmul.mubr.msk.bf16.vlgmr.msra.gmra.mrb[64].mxu0 %vm75_vm0, %v2203_v52 }
0x111e   :  { %3546 = vmatprep.mubr.msk.bf16.mxu0 %vm3835_vm7, %v3834_v4 }
0x111f   :  { %v3787_v2 = vpop.eup %3786 }
0x1120   :  { %v2197_v60 = vmul.f32 %v3787_v2, %v4424_v15  ;;  %v2500_v15 = vsel %vm903_vm8, %v2495_v8, 0 }
0x1122   :  { %v2205_v39 = vpack.c.bf16 %v2197_v60, %v2197_v60 }
0x1139   :  { %v2172_v1 = vpop.xlane.xlu0 %2171 }
0x113a   :  { %3788 = vrcp.f32 %v2172_v1 }
0x113d   :  { %v2178_v58 = vpop.xlane.xlu0 %2177 }
0x113e   :  { %3790 = vrcp.f32 %v2178_v58 }
0x1141   :  { %v2543_v61 = vpop.permute.xlu0 %2542 }
0x1142   :  { %v2548_v0 = vsel %vm903_vm8, %v2543_v61, 0 }
0x1143   :  { %3545 = vmatpush3.bf16.msra.mxu0 %v2548_v0 }
0x1144   :  { %v3789_v7 = vpop.eup %3788  ;;  %3558 = vmatprep.subr.bf16.mxu0 %v3834_v4 }
0x1145   :  { %v2194_v54 = vmul.f32 %v3789_v7, %v4434_v29 }
0x1146   :  { %3547 = vmatmul.mubr.msk.bf16.vlgmr.msra.gmra.mrb[68].mxu0 %vm75_vm0, %v2205_v39 }
0x1147   :  { %v2202_v11 = vpack.c.bf16 %v2194_v54, %v2194_v54  ;;  %3562 = vmatprep.mubr.msk.bf16.mxu0 %vm3835_vm7, %v3834_v4 }
0x1148   :  { %v3791_v16 = vpop.eup %3790 }
0x1149   :  { %3529 = vmatmul.mubr.msk.bf16.vlgmr.msra.gmra.mrb[72].mxu1 %vm75_vm0, %v2202_v11  ;;  %v2196_v17 = vmul.f32 %v3791_v16, %v4438_v9 }
0x114a   :  { %3539 = vmatpush3.bf16.msra.mxu1 %v2500_v15  ;;  %3540 = vmatprep.mubr.msk.bf16.mxu1 %vm3835_vm7, %v3834_v4 }
0x114b   :  { %3550 = vmatprep.subr.bf16.mxu1 %v3834_v4  ;;  %v2204_v31 = vpack.c.bf16 %v2196_v17, %v2196_v17 }
0x1151   :  { %3541 = vmatmul.mubr.msk.bf16.vlgmr.msra.gmra.mrb[76].mxu1 %vm75_vm0, %v2204_v31 }
0x1152   :  { %3554 = vmatprep.mubr.msk.bf16.mxu1 %vm3835_vm7, %v3834_v4  ;;  %3551 = vmatpush3.bf16.msra.mxu1 %v3700_v43 }
0x1153   :  { %3552 = vmatprep.subr.bf16.mxu1 %v3834_v4 }
0x1156   :  { %3553 = vmatpush3.bf16.msra.mxu1 %v3701_v50 }
0x1157   :  { %3566 = vmatprep.subr.bf16.mxu1 %v3834_v4 }
0x118e   :  { %v2248_v22 = vpop.f32.mrb[64].mxu1 }
0x118f   :  { %v2296_v23 = vpop.f32.mrb[56].mxu0  ;;  %v3506_v18 = vpop.f32.mrb[65].mxu1 }
0x1190   :  { %v3512_v6 = vpop.f32.mrb[57].mxu0  ;;  %v2251_v14 = vpop.f32.mrb[66].mxu1 }
0x1191   :  { %v2299_v19 = vpop.f32.mrb[58].mxu0  ;;  %v3507_v29 = vpop.f32.mrb[67].mxu1 }
0x1192   :  { %v3513_v30 = vpop.f32.mrb[59].mxu0 }
0x11e7   :  { %v2344_v26 = vpop.f32.mrb[68].mxu1 }
0x11e8   :  { %v2392_v62 = vpop.f32.mrb[60].mxu0  ;;  %v3518_v13 = vpop.f32.mrb[69].mxu1 }
0x11e9   :  { %v3673_v9 = vpack.i.bf16 %v2392_v62, %v2344_v26  ;;  %v3524_v27 = vpop.f32.mrb[61].mxu0  ;;  %v2347_v34 = vpop.f32.mrb[70].mxu1 }
0x11ea   :  { %v2395_v21 = vpop.f32.mrb[62].mxu0  ;;  %v3519_v24 = vpop.f32.mrb[71].mxu1 }
0x11eb   :  { %3674 = vrot.lane.b32.xlu1 %v3673_v9, %s3842_s1  ;;  %v3525_v36 = vpop.f32.mrb[63].mxu0 }
0x11f0   :  { %v2488_v37 = vpop.f32.mrb[64].mxu0 }
0x11f1   :  { %v3536_v41 = vpop.f32.mrb[65].mxu0 }
0x11f2   :  { %v2491_v63 = vpop.f32.mrb[66].mxu0 }
0x11f3   :  { %v3537_v12 = vpop.f32.mrb[67].mxu0 }
0x11f4   :  { %v3703_v12 = vld [vmem:[%s4603_s6 + $0x18] sm:$0xff]  }
0x1219   :  { %v2584_v44 = vpop.f32.mrb[68].mxu0 }
0x121a   :  { %v3548_v46 = vpop.f32.mrb[69].mxu0 }
0x121b   :  { %v2587_v47 = vpop.f32.mrb[70].mxu0 }
0x121c   :  { %v2440_v48 = vpop.f32.mrb[72].mxu1  ;;  %v3549_v49 = vpop.f32.mrb[71].mxu0 }
0x121d   :  { %v3678_v25 = vpack.i.bf16 %v2488_v37, %v2440_v48  ;;  %v3530_v56 = vpop.f32.mrb[73].mxu1 }
0x121e   :  { %v2443_v57 = vpop.f32.mrb[74].mxu1 }
0x121f   :  { %v3531_v51 = vpop.f32.mrb[75].mxu1  ;;  %3679 = vrot.lane.b32.xlu0 %v3678_v25, %s3843_s28  ;;  %v2717_v25 = vrot.slane %v4297_v42, %v4225_v3 }
0x1224   :  { %v2536_v5 = vpop.f32.mrb[76].mxu1 }
0x1225   :  { %v3683_v35 = vpack.i.bf16 %v2584_v44, %v2536_v5  ;;  %v3542_v45 = vpop.f32.mrb[77].mxu1 }
0x1226   :  { %v2539_v52 = vpop.f32.mrb[78].mxu1 }
0x1227   :  { %v3543_v55 = vpop.f32.mrb[79].mxu1  ;;  %3684 = vrot.lane.b32.xlu1 %v3683_v35, %s3844_s29  ;;  %v2723_v35 = vrot.slane %v4297_v42, %v4230_v10 }
0x125d   :  { %v3675_v1 = vpop.permute.xlu1 %3674 }
0x125e   :  { %v3677_v58 = vunpack.i.h.bf16 %v3675_v1  ;;  %v3676_v60 = vunpack.i.l.bf16 %v3675_v1 }
0x1260   :  { %v2615_v39 = vsel %vm75_vm0, %v2296_v23, %v3677_v58  ;;  %v2614_v54 = vsel %vm75_vm0, %v2248_v22, %v3676_v60  ;;  %v2629_v23 = vrot.slane %v4297_v42, %v3970_v59  ;;  %v3705_v58 = vld [vmem:[%s4604_s7 + $0x28] sm:$0xff]   ;;  %v3706_v60 = vld [vmem:[%s4604_s7 + $0x30] sm:$0xff]  }
0x1291   :  { %v3680_v2 = vpop.permute.xlu0 %3679 }
0x1292   :  { %v3682_v61 = vunpack.i.h.bf16 %v3680_v2  ;;  %v3681_v0 = vunpack.i.l.bf16 %v3680_v2  ;;  %v3704_v2 = vld [vmem:[%s4604_s7 + $0x20] sm:$0xff]  }
0x1294   :  { %v2617_v16 = vsel %vm1309_vm9, %v2615_v39, %v3682_v61  ;;  %v2616_v15 = vsel %vm1309_vm9, %v2614_v54, %v3681_v0  ;;  %v3707_v61 = vld [vmem:[%s4604_s7 + $0x38] sm:$0xff]   ;;  %v2735_v0 = vrot.slane %v4297_v42, %v1427_v20 }
0x1299   :  { %v3685_v7 = vpop.permute.xlu1 %3684 }
0x129a   :  { %v3687_v8 = vunpack.i.h.bf16 %v3685_v7  ;;  %v3686_v11 = vunpack.i.l.bf16 %v3685_v7 }
0x129c   :  { %v2619_v17 = vsel %vm1312_vm10, %v2617_v16, %v3687_v8  ;;  %v2618_v31 = vsel %vm1312_vm10, %v2616_v15, %v3686_v11 }
0x129d   :  { %v2620_v18 = vpack.c.bf16 %v2619_v17, %v2618_v31 }
0x129f   :  { %3555 = vmatmul.mubr.msk.bf16.vlgmr.msra.gmra.mrb[80].mxu1 %vm241_vm6, %v2620_v18 }
0x12a0   :  { %3574 = vmatprep.mubr.msk.bf16.mxu1 %vm3835_vm7, %v3834_v4  ;;  %3567 = vmatpush3.bf16.msra.mxu1 %v3704_v2 }
0x12a1   :  { %3568 = vmatprep.subr.bf16.mxu1 %v3834_v4 }
0x12a4   :  { %3569 = vmatpush3.bf16.msra.mxu1 %v3705_v58 }
0x12a5   :  { %3570 = vmatprep.subr.bf16.mxu1 %v3834_v4 }
0x12a8   :  { %3571 = vmatpush3.bf16.msra.mxu1 %v3706_v60  ;;  %v2923_v60 = vrot.slane %v4297_v42, %v1614_v28 }
0x12a9   :  { %3572 = vmatprep.subr.bf16.mxu1 %v3834_v4 }
0x12ac   :  { %3573 = vmatpush3.bf16.msra.mxu1 %v3707_v61 }
0x1372   :  { %v2679_v22 = vpop.f32.mrb[80].mxu1 }
0x1373   :  { %v2680_v6 = vadd.f32 %v2679_v22, %v2629_v23  ;;  %v3556_v14 = vpop.f32.mrb[81].mxu1 }
0x1374   :  { %v2682_v19 = vpop.f32.mrb[82].mxu1 }
0x1375   :  { %v2683_v29 = vadd.f32 %v2682_v19, %v2629_v23  ;;  %v3557_v30 = vpop.f32.mrb[83].mxu1  ;;  %v2686_v26 = vadd.f32 %v2680_v6, %v4285_v38 }
0x1377   :  { %v2688_v62 = vsel %vm241_vm6, %v2686_v26, 0.0  ;;  %v2687_v13 = vadd.f32 %v2683_v29, %v4287_v40  ;;  %v3702_v40 = vld [vmem:[%s4603_s6 + $0x10] sm:$0xff]  }
0x1378   :  { %2689 = vadd.xlane.f32.xlu0 %v2688_v62  ;;  %3559 = vmatpush3.bf16.msra.mxu0 %v3702_v40 }
0x1379   :  { %v2691_v9 = vsel %vm241_vm6, %v2687_v13, 0.0  ;;  %3560 = vmatprep.subr.bf16.mxu0 %v3834_v4 }
0x137a   :  { %2692 = vadd.xlane.f32.xlu1 %v2691_v9 }
0x137c   :  { %3561 = vmatpush3.bf16.msra.mxu0 %v3703_v12 }
0x137d   :  { %3578 = vmatprep.subr.bf16.mxu0 %v3834_v4 }
0x1405   :  { %v2690_v27 = vpop.xlane.xlu0 %2689 }
0x1406   :  { %v2694_v34 = vmul.f32 0.03125, %v2690_v27 }
0x1407   :  { %v2693_v21 = vpop.xlane.xlu1 %2692 }
0x1408   :  { %v2696_v59 = vsub.f32 %v2686_v26, %v2694_v34  ;;  %v2695_v24 = vmul.f32 0.03125, %v2693_v21 }
0x140a   :  { %v2697_v36 = vsub.f32 %v2687_v13, %v2695_v24  ;;  %v2698_v37 = vmul.f32 %v2696_v59, %v2696_v59 }
0x140c   :  { %v2700_v41 = vsel %vm241_vm6, %v2698_v37, 0.0  ;;  %v2699_v63 = vmul.f32 %v2697_v36, %v2697_v36 }
0x140d   :  { %2701 = vadd.xlane.f32.xlu0 %v2700_v41 }
0x140e   :  { %v2703_v38 = vsel %vm241_vm6, %v2699_v63, 0.0 }
0x1411   :  { %2704 = vadd.xlane.f32.xlu0 %v2703_v38 }
0x149a   :  { %v2702_v43 = vpop.xlane.xlu0 %2701 }
0x149b   :  { %v2706_v44 = vmul.f32 0.03125, %v2702_v43 }
0x149d   :  { %v2708_v46 = vadd.f32 1e-12, %v2706_v44 }
0x149e   :  { %v2705_v47 = vpop.xlane.xlu0 %2704 }
0x149f   :  { %3792 = vrsqrt.f32 %v2708_v46  ;;  %v2707_v48 = vmul.f32 0.03125, %v2705_v47 }
0x14a1   :  { %v2709_v49 = vadd.f32 1e-12, %v2707_v48 }
0x14a3   :  { %3794 = vrsqrt.f32 %v2709_v49 }
0x14a9   :  { %v3793_v50 = vpop.eup %3792 }
0x14aa   :  { %v2712_v56 = vmul.f32 %v3793_v50, %v2696_v59  ;;  %v2823_v59 = vrot.slane %v4297_v42, %v1514_v32 }
0x14ac   :  { %v2718_v51 = vmul.f32 %v2717_v25, %v2712_v56 }
0x14ad   :  { %v3795_v57 = vpop.eup %3794 }
0x14ae   :  { %v2713_v5 = vmul.f32 %v3795_v57, %v2697_v36  ;;  %v2724_v52 = vadd.f32 %v2723_v35, %v2718_v51 }
0x14b0   :  { %v2719_v45 = vmul.f32 %v2717_v25, %v2713_v5  ;;  %v3708_v5 = vld [vmem:[%s4605_s8 + $0x4] ss:$8 sps:$4 sm:$0xff]  }
0x14b2   :  { %v2725_v55 = vadd.f32 %v2723_v35, %v2719_v45  ;;  %v3709_v35 = vld [vmem:[%s4605_s8 + $0x14] ss:$8 sps:$4 sm:$0xff]  }
0x14b4   :  { %v2726_v1 = vpack.c.bf16 %v2725_v55, %v2724_v52 }
0x14b6   :  { %3563 = vmatmul.mubr.msk.bf16.vlgmr.msra.gmra.mrb[72].mxu0 %vm241_vm6, %v2726_v1 }
0x14b7   :  { %3582 = vmatprep.mubr.msk.bf16.mxu0 %vm3835_vm7, %v3834_v4  ;;  %3579 = vmatpush3.bf16.msra.mxu0 %v3708_v5 }
0x14b8   :  { %3580 = vmatprep.subr.bf16.mxu0 %v3834_v4 }
0x14bb   :  { %3581 = vmatpush3.bf16.msra.mxu0 %v3709_v35 }
0x14bc   :  { %3586 = vmatprep.subr.bf16.mxu0 %v3834_v4 }
0x1589   :  { %v2785_v7 = vpop.f32.mrb[72].mxu0 }
0x158a   :  { %v2786_v39 = vadd.f32 %v2785_v7, %v2735_v0  ;;  %v3564_v54 = vpop.f32.mrb[73].mxu0 }
0x158b   :  { %v2788_v8 = vpop.f32.mrb[74].mxu0 }
0x158c   :  { %v2794_v11 = vmul.f32 0.044715, %v2786_v39  ;;  %v2789_v16 = vadd.f32 %v2788_v8, %v2735_v0  ;;  %v3565_v15 = vpop.f32.mrb[75].mxu0  ;;  %v2792_v62 = vmul.f32 0.5, %v2786_v39  ;;  %v2929_v0 = vrot.slane %v4297_v42, %v1620_v33  ;;  %v3711_v33 = vld [vmem:[%s4605_s8 + $0x10] ss:$8 sps:$4 sm:$0xff]  }
0x158d   :  { %v3807_v42 = vld [vmem:[%s4600_s3 + $0x10] sm:$0xf]  ;;  %s3845_s8 = smov [#allocation2]  }
0x158e   :  { %v2796_v17 = vmul.f32 %v2794_v11, %v2786_v39  ;;  %v2795_v31 = vmul.f32 0.044715, %v2789_v16  ;;  %v2793_v13 = vmul.f32 0.5, %v2789_v16  ;;  %s3077_s4 = sshll.u32 %s3845_s8, 4  ;;  %s3078_s4 = int_to_ptr.vmem [resolvable:$true] %s3077_s4 }
0x158f   :  { %s3808_s3 = scalar_lea.vmem %s3078_s4, 32  ;;  %p3813_p1 = scmp.lt.s32.totalorder %s3078_s4, %s3078_s4 }
0x1590   :  { %v2798_v18 = vmul.f32 %v2796_v17, %v2786_v39  ;;  %v2797_v23 = vmul.f32 %v2795_v31, %v2789_v16  ;;  %p3809_p0 = scmp.ne.s32.totalorder %s3078_s4, %s3808_s3  ;;  %p3814_p2 = scmp.lt.s32.totalorder %s3808_s3, %s3808_s3 }
0x1592   :  { %v2800_v22 = vadd.f32 %v2798_v18, %v2786_v39  ;;  %v2799_v6 = vmul.f32 %v2797_v23, %v2789_v16  ;;  %p3815_p3 = por %p3814_p2, %p3813_p1 }
0x1594   :  { %v2802_v14 = vmul.f32 0.7978846, %v2800_v22  ;;  %v2801_v19 = vadd.f32 %v2799_v6, %v2789_v16  ;;  %p3816_p4 = pnand %p3815_p3, %p3809_p0 }
0x1596   :  { %3796 = vtanh.f32 %v2802_v14  ;;  %v2803_v29 = vmul.f32 0.7978846, %v2801_v19  ;;  %v2945_v14 = vrot.slane %v3807_v42, %v4225_v3 }
0x1598   :  { %3798 = vtanh.f32 %v2803_v29 }
0x15a0   :  { %v3797_v30 = vpop.eup %3796 }
0x15a1   :  { %v2806_v20 = vadd.f32 1.0, %v3797_v30 }
0x15a2   :  { %v3799_v26 = vpop.eup %3798 }
0x15a3   :  { %v2807_v9 = vadd.f32 1.0, %v3799_v26  ;;  %v2808_v27 = vmul.f32 %v2806_v20, %v2792_v62 }
0x15a5   :  { %v2809_v34 = vmul.f32 %v2807_v9, %v2793_v13 }
0x15a7   :  { %v2810_v21 = vpack.c.bf16 %v2809_v34, %v2808_v27 }
0x15a9   :  { %3575 = vmatmul.mubr.msk.bf16.vlgmr.msra.gmra.mrb[84].mxu1 %vm157_vm4, %v2810_v21 }
0x167c   :  { %v2885_v24 = vpop.f32.mrb[84].mxu1 }
0x167d   :  { %v2886_v36 = vadd.f32 %v2885_v24, %v2823_v59  ;;  %v3576_v37 = vpop.f32.mrb[85].mxu1 }
0x167e   :  { %v2888_v41 = vpop.f32.mrb[86].mxu1 }
0x167f   :  { %v2892_v63 = vadd.f32 %v2886_v36, %v2724_v52  ;;  %v2889_v38 = vadd.f32 %v2888_v41, %v2823_v59  ;;  %v3577_v40 = vpop.f32.mrb[87].mxu1 }
0x1681   :  { %v2894_v12 = vsel %vm241_vm6, %v2892_v63, 0.0  ;;  %v2893_v43 = vadd.f32 %v2889_v38, %v2725_v55 }
0x1682   :  { %2895 = vadd.xlane.f32.xlu0 %v2894_v12 }
0x1683   :  { %v2897_v44 = vsel %vm241_vm6, %v2893_v43, 0.0 }
0x1684   :  { %2898 = vadd.xlane.f32.xlu1 %v2897_v44 }
0x170f   :  { %v2896_v46 = vpop.xlane.xlu0 %2895 }
0x1710   :  { %v2900_v47 = vmul.f32 0.03125, %v2896_v46 }
0x1711   :  { %v2899_v48 = vpop.xlane.xlu1 %2898 }
0x1712   :  { %v2902_v49 = vsub.f32 %v2892_v63, %v2900_v47  ;;  %v2901_v50 = vmul.f32 0.03125, %v2899_v48 }
0x1714   :  { %v2903_v32 = vsub.f32 %v2893_v43, %v2901_v50  ;;  %v2904_v25 = vmul.f32 %v2902_v49, %v2902_v49 }
0x1716   :  { %v2906_v56 = vsel %vm241_vm6, %v2904_v25, 0.0  ;;  %v2905_v57 = vmul.f32 %v2903_v32, %v2903_v32 }
0x1717   :  { %2907 = vadd.xlane.f32.xlu0 %v2906_v56 }
0x1718   :  { %v2909_v51 = vsel %vm241_vm6, %v2905_v57, 0.0 }
0x1719   :  { %2910 = vadd.xlane.f32.xlu1 %v2909_v51 }
0x17a4   :  { %v2908_v45 = vpop.xlane.xlu0 %2907 }
0x17a5   :  { %v2912_v52 = vmul.f32 0.03125, %v2908_v45 }
0x17a6   :  { %v2911_v55 = vpop.xlane.xlu1 %2910 }
0x17a7   :  { %v2914_v1 = vadd.f32 1e-12, %v2912_v52  ;;  %v2913_v2 = vmul.f32 0.03125, %v2911_v55 }
0x17a9   :  { %3800 = vrsqrt.f32 %v2914_v1  ;;  %v2915_v58 = vadd.f32 1e-12, %v2913_v2 }
0x17ab   :  { %3802 = vrsqrt.f32 %v2915_v58 }
0x17b3   :  { %v3801_v61 = vpop.eup %3800 }
0x17b4   :  { %v2918_v7 = vmul.f32 %v3801_v61, %v2902_v49 }
0x17b5   :  { %v3803_v39 = vpop.eup %3802 }
0x17b6   :  { %v2924_v54 = vmul.f32 %v2923_v60, %v2918_v7  ;;  %v2919_v8 = vmul.f32 %v3803_v39, %v2903_v32 }
0x17b8   :  { %v2930_v11 = vadd.f32 %v2929_v0, %v2924_v54  ;;  %v2925_v16 = vmul.f32 %v2923_v60, %v2919_v8 }
0x17ba   :  { %v2931_v15 = vadd.f32 %v2929_v0, %v2925_v16  ;;  %v2940_v17 = vpack.c.bf16 %v2930_v11, %v2930_v11 }
0x17bc   :  { %v2941_v31 = vpack.c.bf16 %v2931_v15, %v2931_v15  ;;  %v2948_v23 = vunpack.c.l.b16 %v2940_v17 }
0x17be   :  { %v2949_v18 = vunpack.c.l.b16 %v2941_v31 }
0x17c0   :  { %v2950_v22 = vrot.slane %v2949_v18, 7 }
0x17c2   :  { %v2952_v6 = vsel %vm2951_vm11, %v2950_v22, %v2948_v23 }
0x17c3   :  { %v2953_v28 = vpack.c.b16 %v2952_v6, %v2952_v6 }
0x17c5   :  { %3583 = vmatmul.mubr.msk.bf16.vlgmr.msra.gmra.mrb[76].mxu0 %vm241_vm6, %v2953_v28 }
0x17c6   :  { %3590 = vmatprep.mubr.msk.bf16.mxu0 %vm3835_vm7, %v3834_v4  ;;  %3587 = vmatpush3.bf16.msra.mxu0 %v3710_v53 }
0x17c7   :  { %3588 = vmatprep.subr.bf16.mxu0 %v3834_v4  ;;  %v3014_v4 = vrot.slane %v3807_v42, %v4230_v10 }
0x17ca   :  { %3589 = vmatpush3.bf16.msra.mxu0 %v3711_v33 }
0x1898   :  { %v3003_v19 = vpop.f32.mrb[76].mxu0 }
0x1899   :  { %v3004_v29 = vadd.f32 %v3003_v19, %v2945_v14  ;;  %v3584_v30 = vpop.f32.mrb[77].mxu0 }
0x189a   :  { %v3006_v20 = vpop.f32.mrb[78].mxu0 }
0x189b   :  { %3804 = vtanh.f32 %v3004_v29  ;;  %v3585_v26 = vpop.f32.mrb[79].mxu0 }
0x18a5   :  { %v3805_v62 = vpop.eup %3804 }
0x18a6   :  { %v3010_v13 = vpack.c.bf16 %v3805_v62, %v3805_v62 }
0x18a8   :  { %3591 = vmatmul.mubr.msk.bf16.vlgmr.msra.gmra.mrb[80].mxu0 %vm241_vm6, %v3010_v13 }
0x197b   :  { %v3064_v9 = vpop.f32.mrb[80].mxu0 }
0x197c   :  { %v3065_v27 = vadd.f32 %v3064_v9, %v3014_v4  ;;  %v3592_v34 = vpop.f32.mrb[81].mxu0 }
0x197d   :  { %v3067_v21 = vpop.f32.mrb[82].mxu0 }
0x197e   :  { %3070 = vst [vmem:[#allocation2] sm:$0x3] %v3065_v27  ;;  %v3593_v3 = vpop.f32.mrb[83].mxu0 }
0x197f   :  { %3819 = shalt.err (!%p3816_p4)
}
0x1980   :  { %s3820_s0 = scalar_lea.hbm %s4606_s9, 32 }
0x1981   :  { %p3821_p5 = scmp.ne.s32.totalorder %s4606_s9, %s3820_s0  ;;  %p3824_p6 = scmp.lt.u32.totalorder %s3820_s0, %s4606_s9 }
0x1983   :  { %p3826_p7 = pnand %p3824_p6, %p3821_p5 }
0x1985   :  { %3829 = shalt.err (!%p3826_p7)
}
0x1986   :  { %3080 = dma.vmem_to_hbm [thread:$0]  %s3078_s4, 32, %s4606_s9, [#allocation3]  }
0x1987   :  { %3830 = dma.done.wait [#allocation3], 32  }
0x1988   :  { %3831 = vsyncadd [#allocation3], 4294967264 }
0x1989   :  { %3084 = vsyncpa [#allocation3], 1 }

</bundles_post_ra>
